<compile_context>
chip_gen: v5e
topology: v5e:2x2
jax: 0.10.0
libtpu: 0.0.40
codegen_flags: <defaults>
</compile_context>

<pallas_src>
import functools
import math

import jax
import jax.numpy as jnp
from jax import lax
from jax.experimental import pallas as pl
from jax.experimental.pallas import tpu as pltpu


def _gelu_exact(x):
    # PyTorch nn.GELU() default = exact erf formulation.
    return 0.5 * x * (1.0 + lax.erf(x * (1.0 / math.sqrt(2.0))))


def _round_up(x, m):
    return (x + m - 1) // m * m


def convnext_block_kernel(
    xpad_ref,   # (Tp, C)  f32-ish, time-padded input, resident across time tiles
    dww_ref,    # (K, C)   depthwise conv weight (tap, channel)
    dwb_ref,    # (1, C)   depthwise conv bias
    lnw_ref,    # (1, C)   layernorm weight
    lnb_ref,    # (1, C)   layernorm bias
    w1_ref,     # (C, I)   pwconv1 weight (bf16)
    b1_ref,     # (1, I)   pwconv1 bias (f32)
    w2_ref,     # (I, C)   pwconv2 weight (bf16)
    b2_ref,     # (1, C)   pwconv2 bias (f32)
    gamma_ref,  # (1, C)   layer scale
    out_ref,    # (TILE_T, C)
    *,
    kernel_size: int,
    dilation: int,
    pad: int,
    tile_t: int,
    eps: float,
):
    # Element offset of this time tile inside the padded slab.
    t0 = pl.multiple_of(pl.program_id(1) * tile_t, tile_t)

    # ---- depthwise dilated conv1d (groups = C), 'same' output length ----
    # Taps are sliced directly from the resident ref (halo comes for free);
    # acc is initialized from tap 0 (no zero-init VALU pass).
    dww = dww_ref[...]
    acc = xpad_ref[pl.ds(t0, tile_t), :].astype(jnp.float32) * dww[0, :]
    for k in range(1, kernel_size):        # small static loop over taps
        tap = xpad_ref[pl.ds(t0 + k * dilation, tile_t), :].astype(jnp.float32)
        acc = acc + tap * dww[k, :]
    acc = acc + dwb_ref[...]

    # ---- LayerNorm over the channel dim (f32) ----
    mean = jnp.mean(acc, axis=-1, keepdims=True)
    centered = acc - mean
    var = jnp.mean(centered * centered, axis=-1, keepdims=True)
    xn = centered * lax.rsqrt(var + eps)
    xn = xn * lnw_ref[...] + lnb_ref[...]

    # ---- pointwise MLP: Linear -> GELU -> Linear (bf16 MXU, f32 accumulate) ----
    h = jnp.dot(xn.astype(w1_ref.dtype), w1_ref[...],
                preferred_element_type=jnp.float32) + b1_ref[...]
    h = _gelu_exact(h)                     # exact erf, matches nn.GELU()
    y = jnp.dot(h.astype(w2_ref.dtype), w2_ref[...],
                preferred_element_type=jnp.float32) + b2_ref[...]

    # ---- layer scale + residual (residual read late -> short live range) ----
    y = y * gamma_ref[...]
    residual = xpad_ref[pl.ds(t0 + pad, tile_t), :].astype(jnp.float32)
    out_ref[...] = (residual + y).astype(out_ref.dtype)


def convnext_block_forward_btc(x_btc, params, *, kernel_size, dilation,
                               tile_t=256, matmul_dtype=jnp.bfloat16):
    """Channels-last entry point.  x_btc: (B, T, C).  Preferred path: no transposes."""
    B, T, C = x_btc.shape
    I = params["w1"].shape[1]
    assert kernel_size % 2 == 1, "ConvNeXtBlock residual requires odd kernel size"
    pad = dilation * (kernel_size // 2)

    # Time tile: multiple of 8 (f32 sublane), capped by the sequence length.
    tile_t = _round_up(max(8, min(tile_t, _round_up(T, 8))), 8)
    Tr = _round_up(T, tile_t)              # time rounded up to a whole number of tiles
    nt = Tr // tile_t
    Tp = Tr + 2 * pad                      # left halo + right halo + tile alignment

    # Single pad op supplies the conv halo and the tile-alignment slack.
    # TODO(synk): for very long sequences also tile the input slab itself
    # (pl.Element halo / manual DMA) instead of keeping (Tp, C) resident.
    x_pad = jnp.pad(x_btc, ((0, 0), (pad, pad + Tr - T), (0, 0)))

    kern = functools.partial(
        convnext_block_kernel,
        kernel_size=kernel_size, dilation=dilation, pad=pad,
        tile_t=tile_t, eps=1e-6,
    )

    # Rough VMEM budget (bytes): double-buffered input slab + output tiles,
    # single-buffered weights, plus the per-tile intermediates.
    w_bytes = (kernel_size * C + 5 * C + I) * 4 + 2 * C * I * jnp.dtype(matmul_dtype).itemsize
    est = (2 * Tp * C * 4 + 2 * tile_t * C * 4 + w_bytes
           + 4 * tile_t * C * 4 + 2 * tile_t * I * 4)
    vmem_limit = int(min(64 * 2 ** 20, max(32 * 2 ** 20, int(est * 1.5))))

    def build_call(single_buffer_weights):
        if single_buffer_weights:
            def wspec(shape):
                return pl.BlockSpec(shape, lambda b, t: (0,) * len(shape),
                                    pipeline_mode=pl.Buffered(1))
        else:
            def wspec(shape):
                return pl.BlockSpec(shape, lambda b, t: (0,) * len(shape))

        grid_spec = pltpu.PrefetchScalarGridSpec(
            num_scalar_prefetch=0,
            grid=(B, nt),
            in_specs=[
                # padded input: full (Tp, C) slab, constant across the time-tile
                # axis -> DMA'd once per batch, stays resident in VMEM.
                pl.BlockSpec((None, Tp, C), lambda b, t: (b, 0, 0)),
                wspec((kernel_size, C)),   # dw weight
                wspec((1, C)),             # dw bias
                wspec((1, C)),             # ln weight
                wspec((1, C)),             # ln bias
                wspec((C, I)),             # w1 (bf16)
                wspec((1, I)),             # b1
                wspec((I, C)),             # w2 (bf16)
                wspec((1, C)),             # b2
                wspec((1, C)),             # gamma
            ],
            out_specs=pl.BlockSpec((None, tile_t, C), lambda b, t: (b, t, 0)),
        )
        return pl.pallas_call(
            kern,
            out_shape=jax.ShapeDtypeStruct((B, Tr, C), x_btc.dtype),
            grid_spec=grid_spec,
            compiler_params=pltpu.CompilerParams(
                dimension_semantics=("parallel", "parallel"),
                vmem_limit_bytes=vmem_limit,
            ),
        )

    args = (
        x_pad,
        params["dw_w"], params["dw_b"],
        params["ln_w"], params["ln_b"],
        params["w1"].astype(matmul_dtype), params["b1"],
        params["w2"].astype(matmul_dtype), params["b2"],
        params["gamma"],
    )
    try:
        out = build_call(True)(*args)          # single-buffered constant weights
    except Exception:
        out = build_call(False)(*args)         # fallback: default double buffering
    return out[:, :T, :]


def convnext_block_forward(x_ncl, params, *, kernel_size, dilation, tile_t=256):
    """NCL (B, C, T) wrapper matching the PyTorch module layout.

    For best performance keep the surrounding model channels-last and call
    convnext_block_forward_btc directly (avoids these two HBM transposes)."""
    x_btc = jnp.transpose(x_ncl, (0, 2, 1))
    out_btc = convnext_block_forward_btc(
        x_btc, params, kernel_size=kernel_size, dilation=dilation, tile_t=tile_t)
    return jnp.transpose(out_btc, (0, 2, 1))


def reference_forward(x_ncl, params, *, kernel_size, dilation):
    """Pure-JAX f32 reference mirroring the PyTorch forward exactly."""
    B, C, T = x_ncl.shape
    pad = dilation * (kernel_size // 2)
    x_btc = jnp.transpose(x_ncl, (0, 2, 1))
    xp = jnp.pad(x_btc, ((0, 0), (pad, pad), (0, 0)))
    acc = jnp.zeros((B, T, C), jnp.float32)
    for k in range(kernel_size):
        s = k * dilation
        acc = acc + xp[:, s:s + T, :] * params["dw_w"][k, :]
    acc = acc + params["dw_b"]
    mean = jnp.mean(acc, axis=-1, keepdims=True)
    var = jnp.mean((acc - mean) ** 2, axis=-1, keepdims=True)
    xn = (acc - mean) / jnp.sqrt(var + 1e-6)
    xn = xn * params["ln_w"] + params["ln_b"]
    h = xn @ params["w1"] + params["b1"]
    h = 0.5 * h * (1.0 + lax.erf(h / math.sqrt(2.0)))
    y = h @ params["w2"] + params["b2"]
    y = y * params["gamma"]
    out = x_btc + y
    return jnp.transpose(out, (0, 2, 1))


def make_params(key, dim, intermediate_dim, kernel_size, layer_scale_init_value=1e-6):
    ks = jax.random.split(key, 6)
    # PyTorch Conv1d depthwise weight is (dim, 1, K); stored here as (K, dim).
    dw_w = 0.3 * jax.random.normal(ks[0], (kernel_size, dim), jnp.float32)
    dw_b = 0.1 * jax.random.normal(ks[1], (1, dim), jnp.float32)
    ln_w = jnp.ones((1, dim), jnp.float32)
    ln_b = jnp.zeros((1, dim), jnp.float32)
    # nn.Linear(dim, I).weight is (I, dim); stored transposed as (dim, I).
    w1 = (1.0 / math.sqrt(dim)) * jax.random.normal(
        ks[2], (dim, intermediate_dim), jnp.float32)
    b1 = 0.05 * jax.random.normal(ks[3], (1, intermediate_dim), jnp.float32)
    w2 = (1.0 / math.sqrt(intermediate_dim)) * jax.random.normal(
        ks[4], (intermediate_dim, dim), jnp.float32)
    b2 = 0.05 * jax.random.normal(ks[5], (1, dim), jnp.float32)
    gamma = layer_scale_init_value * jnp.ones((1, dim), jnp.float32)
    return dict(dw_w=dw_w, dw_b=dw_b, ln_w=ln_w, ln_b=ln_b,
                w1=w1, b1=b1, w2=w2, b2=b2, gamma=gamma)


if __name__ == "__main__":
    # Small but lane-dense demo (C = 128 -> one full lane width), with a
    # sequence length that is NOT a multiple of the time tile so the
    # tiling + right-pad + slice path is exercised (80 = 2*32 + 16).
    B, dim, T = 2, 128, 80
    intermediate_dim = 256
    kernel_size, dilation = 7, 2

    key = jax.random.PRNGKey(0)
    kx, kp = jax.random.split(key)
    x = jax.random.normal(kx, (B, dim, T), jnp.float32)          # NCL, like PyTorch
    params = make_params(kp, dim, intermediate_dim, kernel_size)

    out = convnext_block_forward(x, params, kernel_size=kernel_size,
                                 dilation=dilation, tile_t=32)
    out = jax.block_until_ready(out)

    ref = reference_forward(x, params, kernel_size=kernel_size, dilation=dilation)
    assert out.shape == (B, dim, T)
    max_err = float(jnp.max(jnp.abs(out - ref)))
    assert jnp.allclose(out, ref, atol=1e-5, rtol=1e-5), f"mismatch vs reference (max abs err {max_err})"

    print("KERNEL_OK")
</pallas_src>

<mosaic_0001>
module attributes {stable_mosaic.version = 11 : i64} {
  func.func @convnext_block_kernel(%arg0: i32, %arg1: i32, %arg2: memref<1x108x128xf32, #tpu.memory_space<vmem>>, %arg3: memref<7x128xf32, #tpu.memory_space<vmem>>, %arg4: memref<1x128xf32, #tpu.memory_space<vmem>>, %arg5: memref<1x128xf32, #tpu.memory_space<vmem>>, %arg6: memref<1x128xf32, #tpu.memory_space<vmem>>, %arg7: memref<128x256xbf16, #tpu.memory_space<vmem>>, %arg8: memref<1x256xf32, #tpu.memory_space<vmem>>, %arg9: memref<256x128xbf16, #tpu.memory_space<vmem>>, %arg10: memref<1x128xf32, #tpu.memory_space<vmem>>, %arg11: memref<1x128xf32, #tpu.memory_space<vmem>>, %arg12: memref<1x32x128xf32, #tpu.memory_space<vmem>>) attributes {dimension_semantics = [#tpu.dimension_semantics<parallel>, #tpu.dimension_semantics<parallel>], iteration_bounds = array<i64: 2, 3>, scalar_prefetch = 0 : i64, scratch_operands = 0 : i64, tpu.core_type = #tpu.core_type<tc>, window_params = [{transform_indices = @transform_0, window_bounds = array<i64: 1, 108, 128>}, {pipeline_mode = #tpu.pipeline_mode<synchronous>, transform_indices = @transform_1, window_bounds = array<i64: 7, 128>}, {pipeline_mode = #tpu.pipeline_mode<synchronous>, transform_indices = @transform_2, window_bounds = array<i64: 1, 128>}, {pipeline_mode = #tpu.pipeline_mode<synchronous>, transform_indices = @transform_3, window_bounds = array<i64: 1, 128>}, {pipeline_mode = #tpu.pipeline_mode<synchronous>, transform_indices = @transform_4, window_bounds = array<i64: 1, 128>}, {pipeline_mode = #tpu.pipeline_mode<synchronous>, transform_indices = @transform_5, window_bounds = array<i64: 128, 256>}, {pipeline_mode = #tpu.pipeline_mode<synchronous>, transform_indices = @transform_6, window_bounds = array<i64: 1, 256>}, {pipeline_mode = #tpu.pipeline_mode<synchronous>, transform_indices = @transform_7, window_bounds = array<i64: 256, 128>}, {pipeline_mode = #tpu.pipeline_mode<synchronous>, transform_indices = @transform_8, window_bounds = array<i64: 1, 128>}, {pipeline_mode = #tpu.pipeline_mode<synchronous>, transform_indices = @transform_9, window_bounds = array<i64: 1, 128>}, {transform_indices = @transform_10, window_bounds = array<i64: 1, 32, 128>}]} {
    %c32_i32 = arith.constant 32 : i32
    %0 = arith.muli %arg1, %c32_i32 : i32
    %1 = tpu.assume_multiple %0, 32 : i32
    %c0 = arith.constant 0 : index
    %c0_0 = arith.constant 0 : index
    %2 = vector.load %arg3[%c0, %c0_0] : memref<7x128xf32, #tpu.memory_space<vmem>>, vector<7x128xf32>
    %c0_1 = arith.constant 0 : index
    %3 = arith.index_cast %1 : i32 to index
    %c0_2 = arith.constant 0 : index
    %4 = vector.load %arg2[%c0_1, %3, %c0_2] : memref<1x108x128xf32, #tpu.memory_space<vmem>>, vector<1x32x128xf32>
    %5 = vector.shape_cast %4 : vector<1x32x128xf32> to vector<32x128xf32>
    %6 = vector.extract_strided_slice %2 {offsets = [0, 0], sizes = [1, 128], strides = [1, 1]} : vector<7x128xf32> to vector<1x128xf32>
    %7 = vector.shape_cast %6 : vector<1x128xf32> to vector<128xf32>
    %8 = vector.shape_cast %7 : vector<128xf32> to vector<1x128xf32>
    %9 = vector.broadcast %8 : vector<1x128xf32> to vector<32x128xf32>
    %10 = arith.mulf %5, %9 : vector<32x128xf32>
    %c2_i32 = arith.constant 2 : i32
    %11 = arith.addi %1, %c2_i32 : i32
    %c0_3 = arith.constant 0 : index
    %12 = arith.index_cast %11 : i32 to index
    %c0_4 = arith.constant 0 : index
    %13 = vector.load %arg2[%c0_3, %12, %c0_4] : memref<1x108x128xf32, #tpu.memory_space<vmem>>, vector<1x32x128xf32>
    %14 = vector.shape_cast %13 : vector<1x32x128xf32> to vector<32x128xf32>
    %15 = vector.extract_strided_slice %2 {offsets = [1, 0], sizes = [1, 128], strides = [1, 1]} : vector<7x128xf32> to vector<1x128xf32>
    %16 = vector.shape_cast %15 : vector<1x128xf32> to vector<128xf32>
    %17 = vector.shape_cast %16 : vector<128xf32> to vector<1x128xf32>
    %18 = vector.broadcast %17 : vector<1x128xf32> to vector<32x128xf32>
    %19 = arith.mulf %14, %18 : vector<32x128xf32>
    %20 = arith.addf %10, %19 : vector<32x128xf32>
    %c4_i32 = arith.constant 4 : i32
    %21 = arith.addi %1, %c4_i32 : i32
    %c0_5 = arith.constant 0 : index
    %22 = arith.index_cast %21 : i32 to index
    %c0_6 = arith.constant 0 : index
    %23 = vector.load %arg2[%c0_5, %22, %c0_6] : memref<1x108x128xf32, #tpu.memory_space<vmem>>, vector<1x32x128xf32>
    %24 = vector.shape_cast %23 : vector<1x32x128xf32> to vector<32x128xf32>
    %25 = vector.extract_strided_slice %2 {offsets = [2, 0], sizes = [1, 128], strides = [1, 1]} : vector<7x128xf32> to vector<1x128xf32>
    %26 = vector.shape_cast %25 : vector<1x128xf32> to vector<128xf32>
    %27 = vector.shape_cast %26 : vector<128xf32> to vector<1x128xf32>
    %28 = vector.broadcast %27 : vector<1x128xf32> to vector<32x128xf32>
    %29 = arith.mulf %24, %28 : vector<32x128xf32>
    %30 = arith.addf %20, %29 : vector<32x128xf32>
    %c6_i32 = arith.constant 6 : i32
    %31 = arith.addi %1, %c6_i32 : i32
    %c0_7 = arith.constant 0 : index
    %32 = arith.index_cast %31 : i32 to index
    %c0_8 = arith.constant 0 : index
    %33 = vector.load %arg2[%c0_7, %32, %c0_8] : memref<1x108x128xf32, #tpu.memory_space<vmem>>, vector<1x32x128xf32>
    %34 = vector.shape_cast %33 : vector<1x32x128xf32> to vector<32x128xf32>
    %35 = vector.extract_strided_slice %2 {offsets = [3, 0], sizes = [1, 128], strides = [1, 1]} : vector<7x128xf32> to vector<1x128xf32>
    %36 = vector.shape_cast %35 : vector<1x128xf32> to vector<128xf32>
    %37 = vector.shape_cast %36 : vector<128xf32> to vector<1x128xf32>
    %38 = vector.broadcast %37 : vector<1x128xf32> to vector<32x128xf32>
    %39 = arith.mulf %34, %38 : vector<32x128xf32>
    %40 = arith.addf %30, %39 : vector<32x128xf32>
    %c8_i32 = arith.constant 8 : i32
    %41 = arith.addi %1, %c8_i32 : i32
    %c0_9 = arith.constant 0 : index
    %42 = arith.index_cast %41 : i32 to index
    %c0_10 = arith.constant 0 : index
    %43 = vector.load %arg2[%c0_9, %42, %c0_10] : memref<1x108x128xf32, #tpu.memory_space<vmem>>, vector<1x32x128xf32>
    %44 = vector.shape_cast %43 : vector<1x32x128xf32> to vector<32x128xf32>
    %45 = vector.extract_strided_slice %2 {offsets = [4, 0], sizes = [1, 128], strides = [1, 1]} : vector<7x128xf32> to vector<1x128xf32>
    %46 = vector.shape_cast %45 : vector<1x128xf32> to vector<128xf32>
    %47 = vector.shape_cast %46 : vector<128xf32> to vector<1x128xf32>
    %48 = vector.broadcast %47 : vector<1x128xf32> to vector<32x128xf32>
    %49 = arith.mulf %44, %48 : vector<32x128xf32>
    %50 = arith.addf %40, %49 : vector<32x128xf32>
    %c10_i32 = arith.constant 10 : i32
    %51 = arith.addi %1, %c10_i32 : i32
    %c0_11 = arith.constant 0 : index
    %52 = arith.index_cast %51 : i32 to index
    %c0_12 = arith.constant 0 : index
    %53 = vector.load %arg2[%c0_11, %52, %c0_12] : memref<1x108x128xf32, #tpu.memory_space<vmem>>, vector<1x32x128xf32>
    %54 = vector.shape_cast %53 : vector<1x32x128xf32> to vector<32x128xf32>
    %55 = vector.extract_strided_slice %2 {offsets = [5, 0], sizes = [1, 128], strides = [1, 1]} : vector<7x128xf32> to vector<1x128xf32>
    %56 = vector.shape_cast %55 : vector<1x128xf32> to vector<128xf32>
    %57 = vector.shape_cast %56 : vector<128xf32> to vector<1x128xf32>
    %58 = vector.broadcast %57 : vector<1x128xf32> to vector<32x128xf32>
    %59 = arith.mulf %54, %58 : vector<32x128xf32>
    %60 = arith.addf %50, %59 : vector<32x128xf32>
    %c12_i32 = arith.constant 12 : i32
    %61 = arith.addi %1, %c12_i32 : i32
    %c0_13 = arith.constant 0 : index
    %62 = arith.index_cast %61 : i32 to index
    %c0_14 = arith.constant 0 : index
    %63 = vector.load %arg2[%c0_13, %62, %c0_14] : memref<1x108x128xf32, #tpu.memory_space<vmem>>, vector<1x32x128xf32>
    %64 = vector.shape_cast %63 : vector<1x32x128xf32> to vector<32x128xf32>
    %65 = vector.extract_strided_slice %2 {offsets = [6, 0], sizes = [1, 128], strides = [1, 1]} : vector<7x128xf32> to vector<1x128xf32>
    %66 = vector.shape_cast %65 : vector<1x128xf32> to vector<128xf32>
    %67 = vector.shape_cast %66 : vector<128xf32> to vector<1x128xf32>
    %68 = vector.broadcast %67 : vector<1x128xf32> to vector<32x128xf32>
    %69 = arith.mulf %64, %68 : vector<32x128xf32>
    %70 = arith.addf %60, %69 : vector<32x128xf32>
    %c0_15 = arith.constant 0 : index
    %c0_16 = arith.constant 0 : index
    %71 = vector.load %arg4[%c0_15, %c0_16] : memref<1x128xf32, #tpu.memory_space<vmem>>, vector<1x128xf32>
    %72 = vector.broadcast %71 : vector<1x128xf32> to vector<32x128xf32>
    %73 = arith.addf %70, %72 : vector<32x128xf32>
    %cst = arith.constant dense<0.000000e+00> : vector<32xf32>
    %74 = vector.multi_reduction <add>, %73, %cst [1] : vector<32x128xf32> to vector<32xf32>
    %75 = vector.shape_cast %74 : vector<32xf32> to vector<32x1xf32>
    %cst_17 = arith.constant 1.280000e+02 : f32
    %76 = vector.broadcast %cst_17 : f32 to vector<32x1xf32>
    %77 = arith.divf %75, %76 : vector<32x1xf32>
    %78 = vector.broadcast %77 : vector<32x1xf32> to vector<32x128xf32>
    %79 = arith.subf %73, %78 : vector<32x128xf32>
    %80 = arith.mulf %79, %79 : vector<32x128xf32>
    %cst_18 = arith.constant dense<0.000000e+00> : vector<32xf32>
    %81 = vector.multi_reduction <add>, %80, %cst_18 [1] : vector<32x128xf32> to vector<32xf32>
    %82 = vector.shape_cast %81 : vector<32xf32> to vector<32x1xf32>
    %cst_19 = arith.constant 1.280000e+02 : f32
    %83 = vector.broadcast %cst_19 : f32 to vector<32x1xf32>
    %84 = arith.divf %82, %83 : vector<32x1xf32>
    %cst_20 = arith.constant 9.99999997E-7 : f32
    %85 = vector.broadcast %cst_20 : f32 to vector<32x1xf32>
    %86 = arith.addf %84, %85 : vector<32x1xf32>
    %87 = math.rsqrt %86 : vector<32x1xf32>
    %88 = vector.broadcast %87 : vector<32x1xf32> to vector<32x128xf32>
    %89 = arith.mulf %79, %88 : vector<32x128xf32>
    %c0_21 = arith.constant 0 : index
    %c0_22 = arith.constant 0 : index
    %90 = vector.load %arg5[%c0_21, %c0_22] : memref<1x128xf32, #tpu.memory_space<vmem>>, vector<1x128xf32>
    %91 = vector.broadcast %90 : vector<1x128xf32> to vector<32x128xf32>
    %92 = arith.mulf %89, %91 : vector<32x128xf32>
    %c0_23 = arith.constant 0 : index
    %c0_24 = arith.constant 0 : index
    %93 = vector.load %arg6[%c0_23, %c0_24] : memref<1x128xf32, #tpu.memory_space<vmem>>, vector<1x128xf32>
    %94 = vector.broadcast %93 : vector<1x128xf32> to vector<32x128xf32>
    %95 = arith.addf %92, %94 : vector<32x128xf32>
    %96 = arith.truncf %95 : vector<32x128xf32> to vector<32x128xbf16>
    %c0_25 = arith.constant 0 : index
    %c0_26 = arith.constant 0 : index
    %97 = vector.load %arg7[%c0_25, %c0_26] : memref<128x256xbf16, #tpu.memory_space<vmem>>, vector<128x256xbf16>
    %cst_27 = arith.constant dense<0.000000e+00> : vector<32x256xf32>
    %98 = tpu.matmul %96, %97, %cst_27 {dimension_numbers = #tpu.dot_dimension_numbers<[1], [0], [0], [1], [0, 0, 1, 1], [], []>} : vector<32x128xbf16>, vector<128x256xbf16>, vector<32x256xf32> -> vector<32x256xf32>
    %c0_28 = arith.constant 0 : index
    %c0_29 = arith.constant 0 : index
    %99 = vector.load %arg8[%c0_28, %c0_29] : memref<1x256xf32, #tpu.memory_space<vmem>>, vector<1x256xf32>
    %100 = vector.broadcast %99 : vector<1x256xf32> to vector<32x256xf32>
    %101 = arith.addf %98, %100 : vector<32x256xf32>
    %cst_30 = arith.constant 5.000000e-01 : f32
    %102 = vector.broadcast %cst_30 : f32 to vector<32x256xf32>
    %103 = arith.mulf %102, %101 : vector<32x256xf32>
    %cst_31 = arith.constant 0.707106769 : f32
    %104 = vector.broadcast %cst_31 : f32 to vector<32x256xf32>
    %105 = arith.mulf %101, %104 : vector<32x256xf32>
    %106 = math.erf %105 : vector<32x256xf32>
    %cst_32 = arith.constant 1.000000e+00 : f32
    %107 = vector.broadcast %cst_32 : f32 to vector<32x256xf32>
    %108 = arith.addf %107, %106 : vector<32x256xf32>
    %109 = arith.mulf %103, %108 : vector<32x256xf32>
    %110 = arith.truncf %109 : vector<32x256xf32> to vector<32x256xbf16>
    %c0_33 = arith.constant 0 : index
    %c0_34 = arith.constant 0 : index
    %111 = vector.load %arg9[%c0_33, %c0_34] : memref<256x128xbf16, #tpu.memory_space<vmem>>, vector<256x128xbf16>
    %cst_35 = arith.constant dense<0.000000e+00> : vector<32x128xf32>
    %112 = tpu.matmul %110, %111, %cst_35 {dimension_numbers = #tpu.dot_dimension_numbers<[1], [0], [0], [1], [0, 0, 1, 1], [], []>} : vector<32x256xbf16>, vector<256x128xbf16>, vector<32x128xf32> -> vector<32x128xf32>
    %c0_36 = arith.constant 0 : index
    %c0_37 = arith.constant 0 : index
    %113 = vector.load %arg10[%c0_36, %c0_37] : memref<1x128xf32, #tpu.memory_space<vmem>>, vector<1x128xf32>
    %114 = vector.broadcast %113 : vector<1x128xf32> to vector<32x128xf32>
    %115 = arith.addf %112, %114 : vector<32x128xf32>
    %c0_38 = arith.constant 0 : index
    %c0_39 = arith.constant 0 : index
    %116 = vector.load %arg11[%c0_38, %c0_39] : memref<1x128xf32, #tpu.memory_space<vmem>>, vector<1x128xf32>
    %117 = vector.broadcast %116 : vector<1x128xf32> to vector<32x128xf32>
    %118 = arith.mulf %115, %117 : vector<32x128xf32>
    %c6_i32_40 = arith.constant 6 : i32
    %119 = arith.addi %1, %c6_i32_40 : i32
    %c0_41 = arith.constant 0 : index
    %120 = arith.index_cast %119 : i32 to index
    %c0_42 = arith.constant 0 : index
    %121 = vector.load %arg2[%c0_41, %120, %c0_42] : memref<1x108x128xf32, #tpu.memory_space<vmem>>, vector<1x32x128xf32>
    %122 = vector.shape_cast %121 : vector<1x32x128xf32> to vector<32x128xf32>
    %123 = arith.addf %122, %118 : vector<32x128xf32>
    %c0_43 = arith.constant 0 : index
    %c0_44 = arith.constant 0 : index
    %c0_45 = arith.constant 0 : index
    %124 = vector.load %arg12[%c0_43, %c0_44, %c0_45] : memref<1x32x128xf32, #tpu.memory_space<vmem>>, vector<1x32x128xf32>
    %125 = vector.shape_cast %124 : vector<1x32x128xf32> to vector<32x128xf32>
    %126 = vector.shape_cast %123 : vector<32x128xf32> to vector<1x32x128xf32>
    tpu.vector_store %arg12[%c0_43, %c0_44, %c0_45], %126 {strides = array<i32>} : memref<1x32x128xf32, #tpu.memory_space<vmem>>, vector<1x32x128xf32>,
    return
  }
  func.func @transform_0(%arg0: i32, %arg1: i32) -> (i32, i32, i32) {
    %c0_i32 = arith.constant 0 : i32
    %c0_i32_0 = arith.constant 0 : i32
    %c0_i32_1 = arith.constant 0 : i32
    return %arg0, %c0_i32, %c0_i32_0 : i32, i32, i32
  }
  func.func @transform_1(%arg0: i32, %arg1: i32) -> (i32, i32) {
    %c0_i32 = arith.constant 0 : i32
    %c0_i32_0 = arith.constant 0 : i32
    %c0_i32_1 = arith.constant 0 : i32
    return %c0_i32, %c0_i32_0 : i32, i32
  }
  func.func @transform_2(%arg0: i32, %arg1: i32) -> (i32, i32) {
    %c0_i32 = arith.constant 0 : i32
    %c0_i32_0 = arith.constant 0 : i32
    %c0_i32_1 = arith.constant 0 : i32
    return %c0_i32, %c0_i32_0 : i32, i32
  }
  func.func @transform_3(%arg0: i32, %arg1: i32) -> (i32, i32) {
    %c0_i32 = arith.constant 0 : i32
    %c0_i32_0 = arith.constant 0 : i32
    %c0_i32_1 = arith.constant 0 : i32
    return %c0_i32, %c0_i32_0 : i32, i32
  }
  func.func @transform_4(%arg0: i32, %arg1: i32) -> (i32, i32) {
    %c0_i32 = arith.constant 0 : i32
    %c0_i32_0 = arith.constant 0 : i32
    %c0_i32_1 = arith.constant 0 : i32
    return %c0_i32, %c0_i32_0 : i32, i32
  }
  func.func @transform_5(%arg0: i32, %arg1: i32) -> (i32, i32) {
    %c0_i32 = arith.constant 0 : i32
    %c0_i32_0 = arith.constant 0 : i32
    %c0_i32_1 = arith.constant 0 : i32
    return %c0_i32, %c0_i32_0 : i32, i32
  }
  func.func @transform_6(%arg0: i32, %arg1: i32) -> (i32, i32) {
    %c0_i32 = arith.constant 0 : i32
    %c0_i32_0 = arith.constant 0 : i32
    %c0_i32_1 = arith.constant 0 : i32
    return %c0_i32, %c0_i32_0 : i32, i32
  }
  func.func @transform_7(%arg0: i32, %arg1: i32) -> (i32, i32) {
    %c0_i32 = arith.constant 0 : i32
    %c0_i32_0 = arith.constant 0 : i32
    %c0_i32_1 = arith.constant 0 : i32
    return %c0_i32, %c0_i32_0 : i32, i32
  }
  func.func @transform_8(%arg0: i32, %arg1: i32) -> (i32, i32) {
    %c0_i32 = arith.constant 0 : i32
    %c0_i32_0 = arith.constant 0 : i32
    %c0_i32_1 = arith.constant 0 : i32
    return %c0_i32, %c0_i32_0 : i32, i32
  }
  func.func @transform_9(%arg0: i32, %arg1: i32) -> (i32, i32) {
    %c0_i32 = arith.constant 0 : i32
    %c0_i32_0 = arith.constant 0 : i32
    %c0_i32_1 = arith.constant 0 : i32
    return %c0_i32, %c0_i32_0 : i32, i32
  }
  func.func @transform_10(%arg0: i32, %arg1: i32) -> (i32, i32, i32) {
    %c0_i32 = arith.constant 0 : i32
    %c0_i32_0 = arith.constant 0 : i32
    return %arg0, %arg1, %c0_i32 : i32, i32, i32
  }
}

module attributes {stable_mosaic.version = 11 : i64} {
  func.func @convnext_block_kernel(%arg0: i32, %arg1: i32, %arg2: memref<1x108x128xf32, #tpu.memory_space<vmem>>, %arg3: memref<7x128xf32, #tpu.memory_space<vmem>>, %arg4: memref<1x128xf32, #tpu.memory_space<vmem>>, %arg5: memref<1x128xf32, #tpu.memory_space<vmem>>, %arg6: memref<1x128xf32, #tpu.memory_space<vmem>>, %arg7: memref<128x256xbf16, #tpu.memory_space<vmem>>, %arg8: memref<1x256xf32, #tpu.memory_space<vmem>>, %arg9: memref<256x128xbf16, #tpu.memory_space<vmem>>, %arg10: memref<1x128xf32, #tpu.memory_space<vmem>>, %arg11: memref<1x128xf32, #tpu.memory_space<vmem>>, %arg12: memref<1x32x128xf32, #tpu.memory_space<vmem>>) attributes {dimension_semantics = [#tpu.dimension_semantics<parallel>, #tpu.dimension_semantics<parallel>], iteration_bounds = array<i64: 2, 3>, scalar_prefetch = 0 : i64, scratch_operands = 0 : i64, tpu.core_type = #tpu.core_type<tc>, window_params = [{transform_indices = @transform_0, window_bounds = array<i64: 1, 108, 128>}, {pipeline_mode = #tpu.pipeline_mode<synchronous>, transform_indices = @transform_1, window_bounds = array<i64: 7, 128>}, {pipeline_mode = #tpu.pipeline_mode<synchronous>, transform_indices = @transform_2, window_bounds = array<i64: 1, 128>}, {pipeline_mode = #tpu.pipeline_mode<synchronous>, transform_indices = @transform_3, window_bounds = array<i64: 1, 128>}, {pipeline_mode = #tpu.pipeline_mode<synchronous>, transform_indices = @transform_4, window_bounds = array<i64: 1, 128>}, {pipeline_mode = #tpu.pipeline_mode<synchronous>, transform_indices = @transform_5, window_bounds = array<i64: 128, 256>}, {pipeline_mode = #tpu.pipeline_mode<synchronous>, transform_indices = @transform_6, window_bounds = array<i64: 1, 256>}, {pipeline_mode = #tpu.pipeline_mode<synchronous>, transform_indices = @transform_7, window_bounds = array<i64: 256, 128>}, {pipeline_mode = #tpu.pipeline_mode<synchronous>, transform_indices = @transform_8, window_bounds = array<i64: 1, 128>}, {pipeline_mode = #tpu.pipeline_mode<synchronous>, transform_indices = @transform_9, window_bounds = array<i64: 1, 128>}, {transform_indices = @transform_10, window_bounds = array<i64: 1, 32, 128>}]} {
    %c32_i32 = arith.constant 32 : i32
    %0 = arith.muli %arg1, %c32_i32 : i32
    %1 = tpu.assume_multiple %0, 32 : i32
    %c0 = arith.constant 0 : index
    %c0_0 = arith.constant 0 : index
    %2 = vector.load %arg3[%c0, %c0_0] : memref<7x128xf32, #tpu.memory_space<vmem>>, vector<7x128xf32>
    %c0_1 = arith.constant 0 : index
    %3 = arith.index_cast %1 : i32 to index
    %c0_2 = arith.constant 0 : index
    %4 = vector.load %arg2[%c0_1, %3, %c0_2] : memref<1x108x128xf32, #tpu.memory_space<vmem>>, vector<1x32x128xf32>
    %5 = vector.shape_cast %4 : vector<1x32x128xf32> to vector<32x128xf32>
    %6 = vector.extract_strided_slice %2 {offsets = [0, 0], sizes = [1, 128], strides = [1, 1]} : vector<7x128xf32> to vector<1x128xf32>
    %7 = vector.shape_cast %6 : vector<1x128xf32> to vector<128xf32>
    %8 = vector.shape_cast %7 : vector<128xf32> to vector<1x128xf32>
    %9 = vector.broadcast %8 : vector<1x128xf32> to vector<32x128xf32>
    %10 = arith.mulf %5, %9 : vector<32x128xf32>
    %c2_i32 = arith.constant 2 : i32
    %11 = arith.addi %1, %c2_i32 : i32
    %c0_3 = arith.constant 0 : index
    %12 = arith.index_cast %11 : i32 to index
    %c0_4 = arith.constant 0 : index
    %13 = vector.load %arg2[%c0_3, %12, %c0_4] : memref<1x108x128xf32, #tpu.memory_space<vmem>>, vector<1x32x128xf32>
    %14 = vector.shape_cast %13 : vector<1x32x128xf32> to vector<32x128xf32>
    %15 = vector.extract_strided_slice %2 {offsets = [1, 0], sizes = [1, 128], strides = [1, 1]} : vector<7x128xf32> to vector<1x128xf32>
    %16 = vector.shape_cast %15 : vector<1x128xf32> to vector<128xf32>
    %17 = vector.shape_cast %16 : vector<128xf32> to vector<1x128xf32>
    %18 = vector.broadcast %17 : vector<1x128xf32> to vector<32x128xf32>
    %19 = arith.mulf %14, %18 : vector<32x128xf32>
    %20 = arith.addf %10, %19 : vector<32x128xf32>
    %c4_i32 = arith.constant 4 : i32
    %21 = arith.addi %1, %c4_i32 : i32
    %c0_5 = arith.constant 0 : index
    %22 = arith.index_cast %21 : i32 to index
    %c0_6 = arith.constant 0 : index
    %23 = vector.load %arg2[%c0_5, %22, %c0_6] : memref<1x108x128xf32, #tpu.memory_space<vmem>>, vector<1x32x128xf32>
    %24 = vector.shape_cast %23 : vector<1x32x128xf32> to vector<32x128xf32>
    %25 = vector.extract_strided_slice %2 {offsets = [2, 0], sizes = [1, 128], strides = [1, 1]} : vector<7x128xf32> to vector<1x128xf32>
    %26 = vector.shape_cast %25 : vector<1x128xf32> to vector<128xf32>
    %27 = vector.shape_cast %26 : vector<128xf32> to vector<1x128xf32>
    %28 = vector.broadcast %27 : vector<1x128xf32> to vector<32x128xf32>
    %29 = arith.mulf %24, %28 : vector<32x128xf32>
    %30 = arith.addf %20, %29 : vector<32x128xf32>
    %c6_i32 = arith.constant 6 : i32
    %31 = arith.addi %1, %c6_i32 : i32
    %c0_7 = arith.constant 0 : index
    %32 = arith.index_cast %31 : i32 to index
    %c0_8 = arith.constant 0 : index
    %33 = vector.load %arg2[%c0_7, %32, %c0_8] : memref<1x108x128xf32, #tpu.memory_space<vmem>>, vector<1x32x128xf32>
    %34 = vector.shape_cast %33 : vector<1x32x128xf32> to vector<32x128xf32>
    %35 = vector.extract_strided_slice %2 {offsets = [3, 0], sizes = [1, 128], strides = [1, 1]} : vector<7x128xf32> to vector<1x128xf32>
    %36 = vector.shape_cast %35 : vector<1x128xf32> to vector<128xf32>
    %37 = vector.shape_cast %36 : vector<128xf32> to vector<1x128xf32>
    %38 = vector.broadcast %37 : vector<1x128xf32> to vector<32x128xf32>
    %39 = arith.mulf %34, %38 : vector<32x128xf32>
    %40 = arith.addf %30, %39 : vector<32x128xf32>
    %c8_i32 = arith.constant 8 : i32
    %41 = arith.addi %1, %c8_i32 : i32
    %c0_9 = arith.constant 0 : index
    %42 = arith.index_cast %41 : i32 to index
    %c0_10 = arith.constant 0 : index
    %43 = vector.load %arg2[%c0_9, %42, %c0_10] : memref<1x108x128xf32, #tpu.memory_space<vmem>>, vector<1x32x128xf32>
    %44 = vector.shape_cast %43 : vector<1x32x128xf32> to vector<32x128xf32>
    %45 = vector.extract_strided_slice %2 {offsets = [4, 0], sizes = [1, 128], strides = [1, 1]} : vector<7x128xf32> to vector<1x128xf32>
    %46 = vector.shape_cast %45 : vector<1x128xf32> to vector<128xf32>
    %47 = vector.shape_cast %46 : vector<128xf32> to vector<1x128xf32>
    %48 = vector.broadcast %47 : vector<1x128xf32> to vector<32x128xf32>
    %49 = arith.mulf %44, %48 : vector<32x128xf32>
    %50 = arith.addf %40, %49 : vector<32x128xf32>
    %c10_i32 = arith.constant 10 : i32
    %51 = arith.addi %1, %c10_i32 : i32
    %c0_11 = arith.constant 0 : index
    %52 = arith.index_cast %51 : i32 to index
    %c0_12 = arith.constant 0 : index
    %53 = vector.load %arg2[%c0_11, %52, %c0_12] : memref<1x108x128xf32, #tpu.memory_space<vmem>>, vector<1x32x128xf32>
    %54 = vector.shape_cast %53 : vector<1x32x128xf32> to vector<32x128xf32>
    %55 = vector.extract_strided_slice %2 {offsets = [5, 0], sizes = [1, 128], strides = [1, 1]} : vector<7x128xf32> to vector<1x128xf32>
    %56 = vector.shape_cast %55 : vector<1x128xf32> to vector<128xf32>
    %57 = vector.shape_cast %56 : vector<128xf32> to vector<1x128xf32>
    %58 = vector.broadcast %57 : vector<1x128xf32> to vector<32x128xf32>
    %59 = arith.mulf %54, %58 : vector<32x128xf32>
    %60 = arith.addf %50, %59 : vector<32x128xf32>
    %c12_i32 = arith.constant 12 : i32
    %61 = arith.addi %1, %c12_i32 : i32
    %c0_13 = arith.constant 0 : index
    %62 = arith.index_cast %61 : i32 to index
    %c0_14 = arith.constant 0 : index
    %63 = vector.load %arg2[%c0_13, %62, %c0_14] : memref<1x108x128xf32, #tpu.memory_space<vmem>>, vector<1x32x128xf32>
    %64 = vector.shape_cast %63 : vector<1x32x128xf32> to vector<32x128xf32>
    %65 = vector.extract_strided_slice %2 {offsets = [6, 0], sizes = [1, 128], strides = [1, 1]} : vector<7x128xf32> to vector<1x128xf32>
    %66 = vector.shape_cast %65 : vector<1x128xf32> to vector<128xf32>
    %67 = vector.shape_cast %66 : vector<128xf32> to vector<1x128xf32>
    %68 = vector.broadcast %67 : vector<1x128xf32> to vector<32x128xf32>
    %69 = arith.mulf %64, %68 : vector<32x128xf32>
    %70 = arith.addf %60, %69 : vector<32x128xf32>
    %c0_15 = arith.constant 0 : index
    %c0_16 = arith.constant 0 : index
    %71 = vector.load %arg4[%c0_15, %c0_16] : memref<1x128xf32, #tpu.memory_space<vmem>>, vector<1x128xf32>
    %72 = vector.broadcast %71 : vector<1x128xf32> to vector<32x128xf32>
    %73 = arith.addf %70, %72 : vector<32x128xf32>
    %cst = arith.constant dense<0.000000e+00> : vector<32xf32>
    %74 = vector.multi_reduction <add>, %73, %cst [1] : vector<32x128xf32> to vector<32xf32>
    %75 = vector.shape_cast %74 : vector<32xf32> to vector<32x1xf32>
    %cst_17 = arith.constant 1.280000e+02 : f32
    %76 = vector.broadcast %cst_17 : f32 to vector<32x1xf32>
    %77 = arith.divf %75, %76 : vector<32x1xf32>
    %78 = vector.broadcast %77 : vector<32x1xf32> to vector<32x128xf32>
    %79 = arith.subf %73, %78 : vector<32x128xf32>
    %80 = arith.mulf %79, %79 : vector<32x128xf32>
    %cst_18 = arith.constant dense<0.000000e+00> : vector<32xf32>
    %81 = vector.multi_reduction <add>, %80, %cst_18 [1] : vector<32x128xf32> to vector<32xf32>
    %82 = vector.shape_cast %81 : vector<32xf32> to vector<32x1xf32>
    %cst_19 = arith.constant 1.280000e+02 : f32
    %83 = vector.broadcast %cst_19 : f32 to vector<32x1xf32>
    %84 = arith.divf %82, %83 : vector<32x1xf32>
    %cst_20 = arith.constant 9.99999997E-7 : f32
    %85 = vector.broadcast %cst_20 : f32 to vector<32x1xf32>
    %86 = arith.addf %84, %85 : vector<32x1xf32>
    %87 = math.rsqrt %86 : vector<32x1xf32>
    %88 = vector.broadcast %87 : vector<32x1xf32> to vector<32x128xf32>
    %89 = arith.mulf %79, %88 : vector<32x128xf32>
    %c0_21 = arith.constant 0 : index
    %c0_22 = arith.constant 0 : index
    %90 = vector.load %arg5[%c0_21, %c0_22] : memref<1x128xf32, #tpu.memory_space<vmem>>, vector<1x128xf32>
    %91 = vector.broadcast %90 : vector<1x128xf32> to vector<32x128xf32>
    %92 = arith.mulf %89, %91 : vector<32x128xf32>
    %c0_23 = arith.constant 0 : index
    %c0_24 = arith.constant 0 : index
    %93 = vector.load %arg6[%c0_23, %c0_24] : memref<1x128xf32, #tpu.memory_space<vmem>>, vector<1x128xf32>
    %94 = vector.broadcast %93 : vector<1x128xf32> to vector<32x128xf32>
    %95 = arith.addf %92, %94 : vector<32x128xf32>
    %96 = arith.truncf %95 : vector<32x128xf32> to vector<32x128xbf16>
    %c0_25 = arith.constant 0 : index
    %c0_26 = arith.constant 0 : index
    %97 = vector.load %arg7[%c0_25, %c0_26] : memref<128x256xbf16, #tpu.memory_space<vmem>>, vector<128x256xbf16>
    %cst_27 = arith.constant dense<0.000000e+00> : vector<32x256xf32>
    %98 = tpu.matmul %96, %97, %cst_27 {dimension_numbers = #tpu.dot_dimension_numbers<[1], [0], [0], [1], [0, 0, 1, 1], [], []>} : vector<32x128xbf16>, vector<128x256xbf16>, vector<32x256xf32> -> vector<32x256xf32>
    %c0_28 = arith.constant 0 : index
    %c0_29 = arith.constant 0 : index
    %99 = vector.load %arg8[%c0_28, %c0_29] : memref<1x256xf32, #tpu.memory_space<vmem>>, vector<1x256xf32>
    %100 = vector.broadcast %99 : vector<1x256xf32> to vector<32x256xf32>
    %101 = arith.addf %98, %100 : vector<32x256xf32>
    %cst_30 = arith.constant 5.000000e-01 : f32
    %102 = vector.broadcast %cst_30 : f32 to vector<32x256xf32>
    %103 = arith.mulf %102, %101 : vector<32x256xf32>
    %cst_31 = arith.constant 0.707106769 : f32
    %104 = vector.broadcast %cst_31 : f32 to vector<32x256xf32>
    %105 = arith.mulf %101, %104 : vector<32x256xf32>
    %106 = math.erf %105 : vector<32x256xf32>
    %cst_32 = arith.constant 1.000000e+00 : f32
    %107 = vector.broadcast %cst_32 : f32 to vector<32x256xf32>
    %108 = arith.addf %107, %106 : vector<32x256xf32>
    %109 = arith.mulf %103, %108 : vector<32x256xf32>
    %110 = arith.truncf %109 : vector<32x256xf32> to vector<32x256xbf16>
    %c0_33 = arith.constant 0 : index
    %c0_34 = arith.constant 0 : index
    %111 = vector.load %arg9[%c0_33, %c0_34] : memref<256x128xbf16, #tpu.memory_space<vmem>>, vector<256x128xbf16>
    %cst_35 = arith.constant dense<0.000000e+00> : vector<32x128xf32>
    %112 = tpu.matmul %110, %111, %cst_35 {dimension_numbers = #tpu.dot_dimension_numbers<[1], [0], [0], [1], [0, 0, 1, 1], [], []>} : vector<32x256xbf16>, vector<256x128xbf16>, vector<32x128xf32> -> vector<32x128xf32>
    %c0_36 = arith.constant 0 : index
    %c0_37 = arith.constant 0 : index
    %113 = vector.load %arg10[%c0_36, %c0_37] : memref<1x128xf32, #tpu.memory_space<vmem>>, vector<1x128xf32>
    %114 = vector.broadcast %113 : vector<1x128xf32> to vector<32x128xf32>
    %115 = arith.addf %112, %114 : vector<32x128xf32>
    %c0_38 = arith.constant 0 : index
    %c0_39 = arith.constant 0 : index
    %116 = vector.load %arg11[%c0_38, %c0_39] : memref<1x128xf32, #tpu.memory_space<vmem>>, vector<1x128xf32>
    %117 = vector.broadcast %116 : vector<1x128xf32> to vector<32x128xf32>
    %118 = arith.mulf %115, %117 : vector<32x128xf32>
    %c6_i32_40 = arith.constant 6 : i32
    %119 = arith.addi %1, %c6_i32_40 : i32
    %c0_41 = arith.constant 0 : index
    %120 = arith.index_cast %119 : i32 to index
    %c0_42 = arith.constant 0 : index
    %121 = vector.load %arg2[%c0_41, %120, %c0_42] : memref<1x108x128xf32, #tpu.memory_space<vmem>>, vector<1x32x128xf32>
    %122 = vector.shape_cast %121 : vector<1x32x128xf32> to vector<32x128xf32>
    %123 = arith.addf %122, %118 : vector<32x128xf32>
    %c0_43 = arith.constant 0 : index
    %c0_44 = arith.constant 0 : index
    %c0_45 = arith.constant 0 : index
    %124 = vector.load %arg12[%c0_43, %c0_44, %c0_45] : memref<1x32x128xf32, #tpu.memory_space<vmem>>, vector<1x32x128xf32>
    %125 = vector.shape_cast %124 : vector<1x32x128xf32> to vector<32x128xf32>
    %126 = vector.shape_cast %123 : vector<32x128xf32> to vector<1x32x128xf32>
    tpu.vector_store %arg12[%c0_43, %c0_44, %c0_45], %126 {strides = array<i32>} : memref<1x32x128xf32, #tpu.memory_space<vmem>>, vector<1x32x128xf32>,
    return
  }
  func.func @transform_0(%arg0: i32, %arg1: i32) -> (i32, i32, i32) {
    %c0_i32 = arith.constant 0 : i32
    %c0_i32_0 = arith.constant 0 : i32
    %c0_i32_1 = arith.constant 0 : i32
    return %arg0, %c0_i32, %c0_i32_0 : i32, i32, i32
  }
  func.func @transform_1(%arg0: i32, %arg1: i32) -> (i32, i32) {
    %c0_i32 = arith.constant 0 : i32
    %c0_i32_0 = arith.constant 0 : i32
    %c0_i32_1 = arith.constant 0 : i32
    return %c0_i32, %c0_i32_0 : i32, i32
  }
  func.func @transform_2(%arg0: i32, %arg1: i32) -> (i32, i32) {
    %c0_i32 = arith.constant 0 : i32
    %c0_i32_0 = arith.constant 0 : i32
    %c0_i32_1 = arith.constant 0 : i32
    return %c0_i32, %c0_i32_0 : i32, i32
  }
  func.func @transform_3(%arg0: i32, %arg1: i32) -> (i32, i32) {
    %c0_i32 = arith.constant 0 : i32
    %c0_i32_0 = arith.constant 0 : i32
    %c0_i32_1 = arith.constant 0 : i32
    return %c0_i32, %c0_i32_0 : i32, i32
  }
  func.func @transform_4(%arg0: i32, %arg1: i32) -> (i32, i32) {
    %c0_i32 = arith.constant 0 : i32
    %c0_i32_0 = arith.constant 0 : i32
    %c0_i32_1 = arith.constant 0 : i32
    return %c0_i32, %c0_i32_0 : i32, i32
  }
  func.func @transform_5(%arg0: i32, %arg1: i32) -> (i32, i32) {
    %c0_i32 = arith.constant 0 : i32
    %c0_i32_0 = arith.constant 0 : i32
    %c0_i32_1 = arith.constant 0 : i32
    return %c0_i32, %c0_i32_0 : i32, i32
  }
  func.func @transform_6(%arg0: i32, %arg1: i32) -> (i32, i32) {
    %c0_i32 = arith.constant 0 : i32
    %c0_i32_0 = arith.constant 0 : i32
    %c0_i32_1 = arith.constant 0 : i32
    return %c0_i32, %c0_i32_0 : i32, i32
  }
  func.func @transform_7(%arg0: i32, %arg1: i32) -> (i32, i32) {
    %c0_i32 = arith.constant 0 : i32
    %c0_i32_0 = arith.constant 0 : i32
    %c0_i32_1 = arith.constant 0 : i32
    return %c0_i32, %c0_i32_0 : i32, i32
  }
  func.func @transform_8(%arg0: i32, %arg1: i32) -> (i32, i32) {
    %c0_i32 = arith.constant 0 : i32
    %c0_i32_0 = arith.constant 0 : i32
    %c0_i32_1 = arith.constant 0 : i32
    return %c0_i32, %c0_i32_0 : i32, i32
  }
  func.func @transform_9(%arg0: i32, %arg1: i32) -> (i32, i32) {
    %c0_i32 = arith.constant 0 : i32
    %c0_i32_0 = arith.constant 0 : i32
    %c0_i32_1 = arith.constant 0 : i32
    return %c0_i32, %c0_i32_0 : i32, i32
  }
  func.func @transform_10(%arg0: i32, %arg1: i32) -> (i32, i32, i32) {
    %c0_i32 = arith.constant 0 : i32
    %c0_i32_0 = arith.constant 0 : i32
    return %arg0, %arg1, %c0_i32 : i32, i32, i32
  }
}

</mosaic_0001>

<bundles_post_ra>
// kernel: tpu_custom_call.1
= control target key start
LH: loop header
LB: loop body
LE: loop exit
PB: predicated region body
PF: predicated region fallthrough
CT: control target
= control target key end

     0   :  { %s2496_s0 = inlined_call_operand.vmem [shape: f32[2,108,128], index: 0, kind: input, shape index: {}]   ;;  %s2497_s1 = inlined_call_operand.vmem [shape: f32[7,128], index: 1, kind: input, shape index: {}]   ;;  %s2498_s2 = inlined_call_operand.vmem [shape: f32[1,128], index: 2, kind: input, shape index: {}]   ;;  %s2499_s3 = inlined_call_operand.vmem [shape: f32[1,128], index: 3, kind: input, shape index: {}]   ;;  %s2500_s4 = inlined_call_operand.vmem [shape: f32[1,128], index: 4, kind: input, shape index: {}]   ;;  %s2501_s5 = inlined_call_operand.vmem [shape: bf16[128,256], index: 5, kind: input, shape index: {}]   ;;  %s2502_s6 = inlined_call_operand.vmem [shape: f32[1,256], index: 6, kind: input, shape index: {}]   ;;  %s2503_s7 = inlined_call_operand.vmem [shape: bf16[256,128], index: 7, kind: input, shape index: {}]   ;;  %s2504_s8 = inlined_call_operand.vmem [shape: f32[1,128], index: 8, kind: input, shape index: {}]   ;;  %s2505_s9 = inlined_call_operand.vmem [shape: f32[1,128], index: 9, kind: input, shape index: {}]   ;;  %s2506_s10 = inlined_call_operand.hbm [shape: f32[2,96,128], index: 10, kind: output, shape index: {}]  }
   0x1   :  { %2509 = sst [smem:[#allocation7_spill]] %s2496_s0 }
   0x2   :  { %2510 = sst [smem:[#allocation8_spill]] %s2497_s1 }
   0x3   :  { %15 = vsyncpa [#allocation3], 0 }
   0x4   :  { %17 = vsyncpa [#allocation3 + $0x1], 0  ;;  %s1860_s13 = smov 0   ;;  %s1862_s14 = smov 0  }
   0x5   :  { %s1864_s15 = smov 0   ;;  %s1866_s16 = smov 0  }
   0x6   :  { %s1868_s17 = smov 0   ;;  %s1870_s18 = smov 0  }
   0x7   :  { %s1872_s19 = smov 0   ;;  %s1874_s20 = smov 0  }
   0x8 LB: > { %2511 = sst [smem:[#allocation5_spill]] %s1792_s18  ;;  %s1384_s21 = sadd.s32 4294967295, %s1800_s20   ;;  %s1800_s20 = sphi %s1874_s20, %s23_s20   ;;  %s1796_s19 = sphi %s1872_s19, %s2527_s19   ;;  %s1792_s18 = sphi %s1870_s18, %s2522_s18   ;;  %s1788_s17 = sphi %s1868_s17, %s2526_s17   ;;  %s1784_s16 = sphi %s1866_s16, %s2521_s16   ;;  %s1780_s15 = sphi %s1864_s15, %s2525_s15   ;;  %s1776_s14 = sphi %s1862_s14, %s2524_s14   ;;  %s1772_s13 = sphi %s1860_s13, %s2523_s13  }
   0x9   : > { %s1385_s22 = sadd.s32 4294967294, %s1800_s20   ;;  %s32_s23 = sadd.s32 1, %s1792_s18 }
   0xa   : > { %p33_p0 = scmp.ge.s32.totalorder %s32_s23, 3  ;;  %s35_s24 = sadd.s32 1, %s1796_s19 }
   0xb   : > { %p269_p1 = scmp.ne.s32.totalorder %s1780_s15, %s1776_s14  ;;  %p270_p2 = scmp.eq.s32.totalorder %s1384_s21, 5 }
   0xc   : > { %s2529_s23 = smov (%p33_p0, %s32_s23), 0  ;;  %s2531_s24 = smov (!%p33_p0, %s35_s24), %s1796_s19 }
   0xd   : > { %2512 = sst [smem:[#allocation6_spill]] %s2529_s23  ;;  %s255_s25 = ssub.s32 %s1792_s18, %s2529_s23 }
   0xe   : > { %p1911_p3 = por %p270_p2, %p269_p1  ;;  %p37_p4 = scmp.ge.s32.totalorder %s2531_s24, 2 }
   0xf   : > { %p275_p5 = scmp.ne.s32.totalorder %s1776_s14, %s1772_s13  ;;  %p276_p6 = scmp.eq.s32.totalorder %s1385_s22, 5 }
  0x10   : > { %p1388_p7 = scmp.ge.s32.totalorder %s1800_s20, 1  ;;  %s2533_s24 = smov (%p37_p4, %s2531_s24), 0 }
  0x11   : > { %p1920_p8 = por %p276_p6, %p275_p5  ;;  %p329_p9 = scmp.lt.s32.totalorder %s1800_s20, 7 }
  0x12   : > { %s254_s28 = ssub.s32 %s1796_s19, %s2533_s24  ;;  %s259_s29 = sadd.s32 1, %s1780_s15 }
  0x13   : > { %s256_s30 = sor.u32 %s255_s25, %s254_s28  ;;  %p330_p10 = pnand %p1388_p7, %p329_p9 }
  0x14   : > { %p257_p11 = scmp.eq.s32.totalorder %s256_s30, 0  ;;  %p367_p12 = scmp.lt.s32.totalorder (!%p330_p10), %s1788_s17, 1 }
  0x15   : > { %333 = sbr.rel (%p330_p10) target bundleno = 710 (0x2c6), region = 60  ;;  %s2515_s1 = sld [smem:[#allocation8_spill]] (!%p330_p10) }
  0x16   : > { %s1929_s11 = scalar_select %p257_p11, %s1780_s15, %s259_s29  }
  0x17   : > { %s1391_s18 = sshll.u32 (!%p330_p10), %s1784_s16, 5  ;;  %s2516_s0 = sld [smem:[#allocation7_spill]] (!%p330_p10) }
  0x18   : > { %s364_s28 = sand.u32 (!%p330_p10), 1, %s1776_s14   ;;  %s1726_s25 = scalar_lea.hbm (!%p330_p10), %s2506_s10, 192 }
  0x1a   : > { %s368_s12 = scalar_select %p367_p12, %s1788_s17, 1  ;;  %v1671_v62 = vld [vmem:[%s2498_s2] ss:$0 sm:$0xff] }
  0x1b   : > { %v374_v0 = vld [vmem:[%s2515_s1] sm:$0x7f]  ;;  %s1596_s1 = smul.u32 12, %s1788_s17 }
  0x1c   : > { %s1595_s23 = smul.u32 112, %s368_s12  ;;  %v380_v1 = vperm.slane %v374_v0, 0  ;;  %v391_v2 = vperm.slane %v374_v0, 1  ;;  %v406_v3 = vperm.slane %v374_v0, 2  ;;  %v421_v4 = vperm.slane %v374_v0, 3  ;;  %s1559_s12 = sshll.u32 %s1784_s16, 2 }
  0x1d   : > { %v436_v13 = vperm.slane %v374_v0, 4  ;;  %v451_v15 = vperm.slane %v374_v0, 5  ;;  %v466_v26 = vperm.slane %v374_v0, 6  ;;  %s1282_s21 = sadd.s32 %s1596_s1, %s1559_s12 }
  0x1e   : > { %s371_s29 = scalar_lea.vmem %s2516_s0, %s1595_s23  ;;  %s1389_s23 = sshll.u32 %s364_s28, 5 }
  0x1f   : > { %s1940_s30 = scalar_lea.vmem %s371_s29, %s1391_s18  ;;  %s2441_s0 = scalar_lea.vmem [#allocation2], %s1389_s23 }
  0x20   : > { %v378_v5 = vld [vmem:[%s1940_s30 + $0x10] sm:$0xff]  ;;  %v1410_v12 = vld [vmem:[%s1940_s30 + $0x18] sm:$0xff]  ;;  %v376_v16 = vld [vmem:[%s1940_s30] sm:$0xff]  ;;  %s1560_s22 = sshll.u32 %s1282_s21, 3  ;;  %s1285_s16 = sshll.u32 %s2441_s0, 4  ;;  %s1286_s16 = int_to_ptr.vmem [resolvable:$true] %s1285_s16 }
  0x21   : > { %v1944_v6 = vld [vmem:[%s1940_s30 + $0x12] sm:$0xff]  ;;  %v383_v8 = vmul.f32 %v380_v1, %v378_v5  ;;  %v1415_v14 = vld [vmem:[%s1940_s30 + $0x1a] sm:$0xff]  ;;  %v1393_v17 = vld [vmem:[%s1940_s30 + $0x2] sm:$0xff]  ;;  %v384_v18 = vmul.f32 %v1410_v12, %v380_v1  ;;  %v381_v22 = vmul.f32 %v380_v1, %v376_v16  ;;  %v439_v32 = vmul.f32 %v1410_v12, %v436_v13  ;;  %s1284_s18 = scalar_lea.hbm %s2506_s10, %s1560_s22  ;;  %s1271_s23 = scalar_lea.sflag [#allocation3], %s364_s28 }
  0x22   : > { %v1947_v7 = vld [vmem:[%s1940_s30 + $0x14] sm:$0xff]  ;;  %v394_v9 = vmul.f32 %v1944_v6, %v391_v2  ;;  %v1420_v21 = vld [vmem:[%s1940_s30 + $0x1c] sm:$0xff]  ;;  %v392_v23 = vmul.f32 %v1393_v17, %v391_v2  ;;  %v1398_v24 = vld [vmem:[%s1940_s30 + $0x4] sm:$0xff]  ;;  %v395_v29 = vmul.f32 %v1415_v14, %v391_v2  ;;  %v454_v38 = vmul.f32 %v1415_v14, %v451_v15  ;;  %s1287_s17 = sshll.u32 %s1284_s18, 4  ;;  %s1288_s17 = int_to_ptr.hbm [resolvable:$true] %s1287_s17 }
  0x23   : > { %v409_v10 = vmul.f32 %v1947_v7, %v406_v3  ;;  %v1405_v11 = vld [vmem:[%s1940_s30 + $0x16] sm:$0xff]  ;;  %v1403_v25 = vld [vmem:[%s1940_s30 + $0x6] sm:$0xff]  ;;  %v407_v27 = vmul.f32 %v1398_v24, %v406_v3  ;;  %v1406_v30 = vld [vmem:[%s1940_s30 + $0x1e] sm:$0xff]  ;;  %v410_v40 = vmul.f32 %v1420_v21, %v406_v3  ;;  %v469_v53 = vmul.f32 %v1420_v21, %v466_v26  ;;  %s1720_s1 = sshra.s32 %s1288_s17, 4  ;;  %s1721_s1 = int_to_ptr.hbm [resolvable:$true] %s1720_s1 }
  0x24   : > { %v398_v19 = vadd.f32 %v394_v9, %v383_v8  ;;  %v424_v20 = vmul.f32 %v1405_v11, %v421_v4  ;;  %v1408_v28 = vld [vmem:[%s1940_s30 + $0x8] sm:$0xff]  ;;  %v396_v33 = vadd.f32 %v392_v23, %v381_v22  ;;  %v422_v34 = vmul.f32 %v1403_v25, %v421_v4  ;;  %v1411_v37 = vld [vmem:[%s1940_s30 + $0x20] sm:$0xff]  ;;  %s1722_s12 = scalar_lea.hbm %s1721_s1, 32  ;;  %p1727_p2 = scmp.lt.s32.totalorder %s1721_s1, %s2506_s10 }
  0x25   : > { %v1413_v35 = vld [vmem:[%s1940_s30 + $0xa] sm:$0xff]  ;;  %v399_v39 = vadd.f32 %v395_v29, %v384_v18  ;;  %v425_v41 = vmul.f32 %v1406_v30, %v421_v4  ;;  %v437_v44 = vmul.f32 %v1408_v28, %v436_v13  ;;  %v440_v45 = vmul.f32 %v1411_v37, %v436_v13  ;;  %v1416_v46 = vld [vmem:[%s1940_s30 + $0x22] sm:$0xff]  ;;  %p1723_p13 = scmp.ne.s32.totalorder %s1721_s1, %s1722_s12  ;;  %p1728_p4 = scmp.lt.s32.totalorder %s1726_s25, %s1722_s12 }
  0x26   : > { %v413_v31 = vadd.f32 %v409_v10, %v398_v19  ;;  %v1418_v36 = vld [vmem:[%s1940_s30 + $0xc] sm:$0xff]  ;;  %v411_v43 = vadd.f32 %v407_v27, %v396_v33  ;;  %v382_v49 = vmul.f32 %v1408_v28, %v380_v1  ;;  %v393_v50 = vmul.f32 %v1413_v35, %v391_v2  ;;  %v1421_v58 = vld [vmem:[%s1940_s30 + $0x24] sm:$0xff] }
  0x27   : > { %v1404_v47 = vld [vmem:[%s1940_s30 + $0xe] sm:$0xff]  ;;  %v414_v48 = vadd.f32 %v410_v40, %v399_v39  ;;  %v408_v51 = vmul.f32 %v1418_v36, %v406_v3  ;;  %v452_v55 = vmul.f32 %v1413_v35, %v451_v15  ;;  %v455_v57 = vmul.f32 %v1416_v46, %v451_v15  ;;  %p1724_p0 = pnand %p1723_p13, %p1911_p3  ;;  %p1729_p5 = por %p1728_p4, %p1727_p2 }
  0x28   : > { %v428_v42 = vadd.f32 %v424_v20, %v413_v31  ;;  %v426_v54 = vadd.f32 %v422_v34, %v411_v43  ;;  %v397_v59 = vadd.f32 %v393_v50, %v382_v49  ;;  %v423_v60 = vmul.f32 %v1404_v47, %v421_v4  ;;  %v1480_v43 = vld [vmem:[%s2501_s5 + $0x70] sm:$0xf]  ;;  %v1482_v47 = vld [vmem:[%s2501_s5 + $0x78] sm:$0xf0]  ;;  %v1472_v49 = vld [vmem:[%s2501_s5 + $0x60] sm:$0xf] }
  0x29   : > { %v429_v56 = vadd.f32 %v425_v41, %v414_v48  ;;  %v467_v0 = vmul.f32 %v1418_v36, %v466_v26  ;;  %v438_v2 = vmul.f32 %v436_v13, %v378_v5  ;;  %v470_v10 = vmul.f32 %v1421_v58, %v466_v26  ;;  %v1576_v50 = vld [vmem:[%s2501_s5 + $0x64] sm:$0xf0]  ;;  %p1725_p1 = pneg %p1724_p0 }
  0x2a   : > { %v443_v52 = vadd.f32 %v439_v32, %v428_v42  ;;  %v441_v63 = vadd.f32 %v437_v44, %v426_v54  ;;  %v412_v1 = vadd.f32 %v408_v51, %v397_v59  ;;  %v453_v14 = vmul.f32 %v1944_v6, %v451_v15  ;;  %v1578_v44 = vld [vmem:[%s2501_s5 + $0x74] sm:$0xf0]  ;;  %v1575_v51 = vld [vmem:[%s2501_s5 + $0x64] sm:$0xf]  ;;  %v1466_v59 = vld [vmem:[%s2501_s5 + $0x58] sm:$0xf0] }
  0x2b   : > { %v444_v8 = vadd.f32 %v440_v45, %v429_v56  ;;  %v468_v18 = vmul.f32 %v1947_v7, %v466_v26  ;;  %v1802_v13 = vmov 128.0   ;;  %v1577_v45 = vld [vmem:[%s2501_s5 + $0x74] sm:$0xf]  ;;  %v1481_v46 = vor.u32 %v1578_v44, %v1480_v43  ;;  %v1574_v56 = vld [vmem:[%s2501_s5 + $0x54] sm:$0xf0]  ;;  %p1730_p6 = pnand %p1729_p5, %p1725_p1 }
  0x2c   : > { %v458_v61 = vadd.f32 %v454_v38, %v443_v52  ;;  %v456_v9 = vadd.f32 %v452_v55, %v441_v63  ;;  %v427_v12 = vadd.f32 %v423_v60, %v412_v1  ;;  %1676 = vrcp.f32 %v1802_v13  ;;  %v1464_v55 = vld [vmem:[%s2501_s5 + $0x50] sm:$0xf]  ;;  %v1571_v63 = vld [vmem:[%s2501_s5 + $0x44] sm:$0xf]  ;;  %v1424_v13 = vld [vmem:[%s2501_s5] sm:$0xf] }
  0x2d   : > { %v459_v11 = vadd.f32 %v455_v57, %v444_v8  ;;  %v1485_v48 = vor.u32 %v1577_v45, %v1482_v47  ;;  %690 = vmatpush.bf16.msra.mxu0 %v1481_v46  ;;  %v1473_v52 = vor.u32 %v1576_v50, %v1472_v49  ;;  %v1573_v57 = vld [vmem:[%s2501_s5 + $0x54] sm:$0xf]  ;;  %v1465_v58 = vor.u32 %v1574_v56, %v1464_v55  ;;  %v1458_v8 = vld [vmem:[%s2501_s5 + $0x48] sm:$0xf0] }
  0x2e   : > { %v473_v3 = vadd.f32 %v469_v53, %v458_v61  ;;  %v471_v17 = vadd.f32 %v467_v0, %v456_v9  ;;  %v442_v4 = vadd.f32 %v438_v2, %v427_v12  ;;  %v1474_v53 = vld [vmem:[%s2501_s5 + $0x68] sm:$0xf0]  ;;  %v1469_v60 = vor.u32 %v1573_v57, %v1466_v59  ;;  %v1456_v61 = vld [vmem:[%s2501_s5 + $0x40] sm:$0xf]  ;;  %v1448_v2 = vld [vmem:[%s2501_s5 + $0x30] sm:$0xf] }
  0x2f   : > { %v474_v20 = vadd.f32 %v470_v10, %v459_v11  ;;  %709 = vmatpush.bf16.msra.mxu1 %v1485_v48  ;;  %v1477_v54 = vor.u32 %v1575_v51, %v1474_v53  ;;  %v1461_v1 = vor.u32 %v1571_v63, %v1458_v8  ;;  %v1569_v9 = vld [vmem:[%s2501_s5 + $0x34] sm:$0xf]  ;;  %v1450_v11 = vld [vmem:[%s2501_s5 + $0x38] sm:$0xf0]  ;;  %v1672_v63 = vld [vmem:[%s2499_s3] ss:$0 sm:$0xff] }
  0x30   : > { %v481_v16 = vadd.f32 %v1671_v62, %v473_v3  ;;  %v479_v19 = vadd.f32 %v1671_v62, %v471_v17  ;;  %v457_v21 = vadd.f32 %v453_v14, %v442_v4  ;;  %v1570_v3 = vld [vmem:[%s2501_s5 + $0x34] sm:$0xf0]  ;;  %v1453_v12 = vor.u32 %v1569_v9, %v1450_v11  ;;  %v1440_v14 = vld [vmem:[%s2501_s5 + $0x20] sm:$0xf]  ;;  %v1567_v17 = vld [vmem:[%s2501_s5 + $0x24] sm:$0xf] }
  0x31   : > { %v482_v23 = vadd.f32 %v1671_v62, %v474_v20  ;;  %691 = vmatpush.bf16.msra.mxu0 %v1473_v52  ;;  %v1449_v10 = vor.u32 %v1570_v3, %v1448_v2  ;;  %v1432_v20 = vld [vmem:[%s2501_s5 + $0x10] sm:$0xf] }
  0x32   : > { %487 = vadd.xlane.f32.xlu1 %v481_v16  ;;  %483 = vadd.xlane.f32.xlu0 %v479_v19  ;;  %v472_v22 = vadd.f32 %v468_v18, %v457_v21  ;;  %v1677_v24 = vpop.eup %1676  ;;  %v1442_v18 = vld [vmem:[%s2501_s5 + $0x28] sm:$0xf0]  ;;  %v1566_v21 = vld [vmem:[%s2501_s5 + $0x14] sm:$0xf0] }
  0x33   : > { %v492_v25 = vmul.f32 128.0, %v1677_v24  ;;  %vm496_vm0 = vweird.f32 %v1677_v24  ;;  %710 = vmatpush.bf16.msra.mxu1 %v1477_v54 }
  0x34   : > { %v480_v5 = vadd.f32 %v1671_v62, %v472_v22  ;;  %v1572_v62 = vld [vmem:[%s2501_s5 + $0x44] sm:$0xf0]  ;;  %v1565_v22 = vld [vmem:[%s2501_s5 + $0x14] sm:$0xf] }
  0x35   : > { %v493_v6 = vsub.f32 1.0, %v492_v25  ;;  %692 = vmatpush.bf16.msra.mxu0 %v1465_v58  ;;  %v1457_v0 = vor.u32 %v1572_v62, %v1456_v61 }
  0x37   : > { %v494_v15 = vmul.f32 %v1677_v24, %v493_v6  ;;  %711 = vmatpush.bf16.msra.mxu1 %v1469_v60  ;;  %v1563_v6 = vld [vmem:[%s2501_s5 + $0x4] sm:$0xf] }
  0x39   : > { %v495_v27 = vadd.f32 %v1677_v24, %v494_v15  ;;  %693 = vmatpush.bf16.msra.mxu0 %v1457_v0  ;;  %v1426_v15 = vld [vmem:[%s2501_s5 + $0x8] sm:$0xf0] }
  0x3a   : > { %489 = vadd.xlane.f32.xlu1 %v482_v23  ;;  %485 = vadd.xlane.f32.xlu0 %v480_v5 }
  0x3b   : > { %v1972_v28 = vsel %vm496_vm0, %v1677_v24, %v495_v27  ;;  %712 = vmatpush.bf16.msra.mxu1 %v1461_v1  ;;  %v1564_v24 = vld [vmem:[%s2501_s5 + $0x4] sm:$0xf0] }
  0x3d   : > { %694 = vmatpush.bf16.msra.mxu0 %v1449_v10  ;;  %v1673_v10 = vld [vmem:[%s2500_s4] ss:$0 sm:$0xff] }
  0x3f   : > { %713 = vmatpush.bf16.msra.mxu1 %v1453_v12 }
  0xa5   : > { %v488_v7 = vpop.xlane.xlu1 %487  ;;  %v484_v29 = vpop.xlane.xlu0 %483 }
  0xa6   : > { %v500_v26 = vmul.f32 %v1972_v28, %v488_v7  ;;  %v498_v31 = vmul.f32 %v1972_v28, %v484_v29 }
  0xa8   : > { %v1975_v30 = vsub.f32 %v481_v16, %v500_v26  ;;  %v1980_v33 = vsub.f32 %v479_v19, %v498_v31  ;;  %v1568_v16 = vld [vmem:[%s2501_s5 + $0x24] sm:$0xf0]  ;;  %v1445_v19 = vor.u32 %v1567_v17, %v1442_v18  ;;  %v1425_v26 = vor.u32 %v1564_v24, %v1424_v13  ;;  %v604_v24 = vld [vmem:[%s2502_s6] sm:$0x3] }
  0xa9   : > { %v1441_v4 = vor.u32 %v1568_v16, %v1440_v14  ;;  %v1429_v31 = vor.u32 %v1563_v6, %v1426_v15  ;;  %v2109_v6 = vperm.slane %v604_v24, 1 }
  0xaa   : > { %v508_v32 = vmul.f32 %v1975_v30, %v1975_v30  ;;  %v506_v34 = vmul.f32 %v1980_v33, %v1980_v33  ;;  %714 = vmatpush.bf16.msra.mxu1 %v1445_v19 }
  0xab   : > { %695 = vmatpush.bf16.msra.mxu0 %v1441_v4 }
  0xac   : > { %514 = vadd.xlane.f32.xlu0 %v508_v32  ;;  %510 = vadd.xlane.f32.xlu2 %v506_v34 }
  0xad   : > { %v490_v35 = vpop.xlane.xlu1 %489  ;;  %v486_v37 = vpop.xlane.xlu0 %485 }
  0xae   : > { %v501_v36 = vmul.f32 %v1972_v28, %v490_v35  ;;  %v499_v39 = vmul.f32 %v1972_v28, %v486_v37 }
  0xb0   : > { %v1985_v38 = vsub.f32 %v482_v23, %v501_v36  ;;  %v1988_v40 = vsub.f32 %v480_v5, %v499_v39  ;;  %v1433_v23 = vor.u32 %v1566_v21, %v1432_v20  ;;  %v1434_v5 = vld [vmem:[%s2501_s5 + $0x18] sm:$0xf0] }
  0xb1   : > { %v1437_v25 = vor.u32 %v1565_v22, %v1434_v5 }
  0xb2   : > { %v509_v41 = vmul.f32 %v1985_v38, %v1985_v38  ;;  %v507_v42 = vmul.f32 %v1988_v40, %v1988_v40  ;;  %696 = vmatpush.bf16.msra.mxu0 %v1433_v23 }
  0xb3   : > { %715 = vmatpush.bf16.msra.mxu1 %v1437_v25  ;;  %v2107_v25 = vperm.slane %v604_v24, 0 }
  0xb4   : > { %516 = vadd.xlane.f32.xlu1 %v509_v41  ;;  %512 = vadd.xlane.f32.xlu2 %v507_v42 }
  0xb6   : > { %697 = vmatpush.bf16.msra.mxu0 %v1425_v26 }
  0xb7   : > { %716 = vmatpush.bf16.msra.mxu1 %v1429_v31  ;;  %v1594_v31 = vld [vmem:[%s2503_s7 + $0x78] sm:$0xff] }
  0xb8   : > { %1235 = vmatpush.bf16.msra.mxu3 %v1594_v31 }
 0x11f   : > { %v515_v27 = vpop.xlane.xlu0 %514  ;;  %v511_v7 = vpop.xlane.xlu2 %510 }
 0x120   : > { %v518_v29 = vmul.f32 %v511_v7, %v1972_v28  ;;  %v520_v32 = vmul.f32 %v515_v27, %v1972_v28 }
 0x122   : > { %v522_v34 = vadd.f32 1e-06, %v518_v29  ;;  %v524_v35 = vadd.f32 1e-06, %v520_v32  ;;  %v1586_v29 = vld [vmem:[%s2503_s7 + $0x38] sm:$0xff] }
 0x123   : > { %1216 = vmatpush.bf16.msra.mxu2 %v1586_v29 }
 0x124   : > { %1678 = vrsqrt.f32 %v522_v34  ;;  %vm532_vm2 = vweird.f32 %v522_v34  ;;  %vm552_vm9 = vweird.f32 %v524_v35 }
 0x125   : > { %1680 = vrsqrt.f32 %v524_v35 }
 0x127   : > { %v517_v36 = vpop.xlane.xlu1 %516  ;;  %v513_v39 = vpop.xlane.xlu2 %512 }
 0x128   : > { %v521_v37 = vmul.f32 %v517_v36, %v1972_v28  ;;  %v519_v42 = vmul.f32 %v513_v39, %v1972_v28  ;;  %v1593_v39 = vld [vmem:[%s2503_s7 + $0x70] sm:$0xff] }
 0x129   : > { %1236 = vmatpush.bf16.msra.mxu3 %v1593_v39 }
 0x12a   : > { %v525_v41 = vadd.f32 1e-06, %v521_v37  ;;  %v1679_v43 = vpop.eup %1678  ;;  %v523_v44 = vadd.f32 1e-06, %v519_v42  ;;  %v1585_v37 = vld [vmem:[%s2503_s7 + $0x30] sm:$0xff] }
 0x12b   : > { %v527_v45 = vmul.f32 %v1679_v43, %v522_v34  ;;  %v1681_v47 = vpop.eup %1680  ;;  %vm533_vm1 = vweird.f32 %v1679_v43  ;;  %1217 = vmatpush.bf16.msra.mxu2 %v1585_v37 }
 0x12c   : > { %1682 = vrsqrt.f32 %v525_v41  ;;  %v547_v54 = vmul.f32 %v1681_v47, %v524_v35  ;;  %vm534_vm3 = vmor %vm532_vm2, %vm533_vm1  ;;  %vm542_vm5 = vweird.f32 %v523_v44  ;;  %vm562_vm7 = vweird.f32 %v525_v41 }
 0x12d   : > { %1684 = vrsqrt.f32 %v523_v44  ;;  %v528_v46 = vmul.f32 %v1679_v43, %v527_v45  ;;  %vm553_vm10 = vweird.f32 %v1681_v47 }
 0x12e   : > { %v548_v57 = vmul.f32 %v1681_v47, %v547_v54  ;;  %vm554_vm12 = vmor %vm552_vm9, %vm553_vm10 }
 0x12f   : > { %v529_v48 = vmul.f32 0.5, %v528_v46 }
 0x130   : > { %v549_v0 = vmul.f32 0.5, %v548_v57  ;;  %v1583_v57 = vld [vmem:[%s2503_s7 + $0x20] sm:$0xff] }
 0x131   : > { %v530_v50 = vsub.f32 1.5, %v529_v48 }
 0x132   : > { %v1683_v49 = vpop.eup %1682  ;;  %v550_v11 = vsub.f32 1.5, %v549_v0 }
 0x133   : > { %v557_v51 = vmul.f32 %v1683_v49, %v525_v41  ;;  %v1685_v52 = vpop.eup %1684  ;;  %v531_v53 = vmul.f32 %v1679_v43, %v530_v50  ;;  %vm563_vm8 = vweird.f32 %v1683_v49 }
 0x134   : > { %v537_v55 = vmul.f32 %v1685_v52, %v523_v44  ;;  %vm543_vm4 = vweird.f32 %v1685_v52  ;;  %vm564_vm11 = vmor %vm562_vm7, %vm563_vm8  ;;  %v551_v17 = vmul.f32 %v1681_v47, %v550_v11 }
 0x135   : > { %v558_v56 = vmul.f32 %v1683_v49, %v557_v51  ;;  %v535_v59 = vsel %vm534_vm3, %v1679_v43, %v531_v53  ;;  %vm544_vm6 = vmor %vm542_vm5, %vm543_vm4  ;;  %v1584_v51 = vld [vmem:[%s2503_s7 + $0x28] sm:$0xff] }
 0x136   : > { %v538_v28 = vmul.f32 %v1685_v52, %v537_v55  ;;  %v566_v62 = vmul.f32 %v535_v59, %v1980_v33  ;;  %1218 = vmatpush.bf16.msra.mxu2 %v1584_v51 }
 0x137   : > { %v559_v60 = vmul.f32 0.5, %v558_v56 }
 0x138   : > { %v539_v58 = vmul.f32 0.5, %v538_v28  ;;  %v574_v9 = vmul.f32 %v1672_v63, %v566_v62 }
 0x139   : > { %v560_v1 = vsub.f32 1.5, %v559_v60 }
 0x13a   : > { %v540_v61 = vsub.f32 1.5, %v539_v58  ;;  %v582_v14 = vadd.f32 %v1673_v10, %v574_v9  ;;  %v1591_v58 = vld [vmem:[%s2503_s7 + $0x60] sm:$0xff]  ;;  %1219 = vmatpush.bf16.msra.mxu2 %v1583_v57 }
 0x13b   : > { %v561_v12 = vmul.f32 %v1683_v49, %v560_v1  ;;  %v1587_v57 = vld [vmem:[%s2503_s7 + $0x40] sm:$0xff] }
 0x13c   : > { %v541_v8 = vmul.f32 %v1685_v52, %v540_v61 }
 0x13d   : > { %v565_v18 = vsel %vm564_vm11, %v1683_v49, %v561_v12 }
 0x13e   : > { %v545_v2 = vsel %vm544_vm6, %v1685_v52, %v541_v8  ;;  %v569_v19 = vmul.f32 %v565_v18, %v1985_v38  ;;  %v1592_v52 = vld [vmem:[%s2503_s7 + $0x68] sm:$0xff] }
 0x13f   : > { %v567_v3 = vmul.f32 %v545_v2, %v1988_v40  ;;  %v555_v40 = vsel %vm554_vm12, %v1681_v47, %v551_v17  ;;  %1237 = vmatpush.bf16.msra.mxu3 %v1592_v52  ;;  %v1582_v17 = vld [vmem:[%s2503_s7 + $0x18] sm:$0xff] }
 0x140   : > { %v568_v20 = vmul.f32 %v555_v40, %v1975_v30  ;;  %v577_v21 = vmul.f32 %v1672_v63, %v569_v19  ;;  %1220 = vmatpush.bf16.msra.mxu2 %v1582_v17 }
 0x141   : > { %v575_v33 = vmul.f32 %v1672_v63, %v567_v3 }
 0x142   : > { %v576_v22 = vmul.f32 %v1672_v63, %v568_v20  ;;  %v585_v23 = vadd.f32 %v1673_v10, %v577_v21  ;;  %v1581_v21 = vld [vmem:[%s2503_s7 + $0x10] sm:$0xff] }
 0x143   : > { %v583_v16 = vadd.f32 %v1673_v10, %v575_v33  ;;  %1238 = vmatpush.bf16.msra.mxu3 %v1591_v58 }
 0x144   : > { %v584_v5 = vadd.f32 %v1673_v10, %v576_v22  ;;  %v1589_v22 = vld [vmem:[%s2503_s7 + $0x50] sm:$0xff]  ;;  %1221 = vmatpush.bf16.msra.mxu2 %v1581_v21 }
 0x145   : > { %v586_v4 = vpack.c.bf16 %v583_v16, %v582_v14 }
 0x146   : > { %v587_v13 = vpack.c.bf16 %v585_v23, %v584_v5 }
 0x147   : > { %698 = vmatmul.bf16.vlgmr.msra.gmra.mxu0 %v586_v4  ;;  %717 = vmatmul.bf16.vlgmr.msra.gmra.mxu1 %v586_v4  ;;  %v1590_v4 = vld [vmem:[%s2503_s7 + $0x58] sm:$0xff] }
 0x148   : > { %1239 = vmatpush.bf16.msra.mxu3 %v1590_v4 }
 0x14c   : > { %1240 = vmatpush.bf16.msra.mxu3 %v1589_v22 }
 0x157   : > { %703 = vmatmul.bf16.gmra.mxu0 %v587_v13  ;;  %722 = vmatmul.bf16.gmra.mxu1 %v587_v13 }
 0x1c4   : > { %v699_v15 = vpop.f32.mrf.mxu0  ;;  %v718_v27 = vpop.f32.mrf.mxu1 }
 0x1c5   : > { %v2112_v38 = vadd.f32 %v699_v15, %v2107_v25  ;;  %v2115_v30 = vadd.f32 %v718_v27, %v2109_v6 }
 0x1c7   : > { %v2118_v7 = vmul.f32 0.70710677, %v2112_v38  ;;  %v2121_v26 = vmul.f32 0.70710677, %v2115_v30 }
 0x1c9   : > { %v744_v32 = vmul.f32 %v2118_v7, %v2118_v7  ;;  %v784_v34 = vmul.f32 %v2121_v26, %v2121_v26 }
 0x1cb   : > { %v2133_v35 = vmin.f32 %v744_v32, 16.0  ;;  %v2135_v36 = vmin.f32 %v784_v34, 16.0 }
 0x1cc   : > { %v701_v41 = vpop.f32.mrf.mxu0  ;;  %v720_v42 = vpop.f32.mrf.mxu1 }
 0x1cd   : > { %v746_v43 = vmul.f32 2.1237322e-06, %v2133_v35  ;;  %v2145_v44 = vadd.f32 %v701_v41, %v2107_v25  ;;  %v2148_v45 = vadd.f32 %v720_v42, %v2109_v6  ;;  %v757_v46 = vmul.f32 3.8918573e-05, %v2133_v35  ;;  %v1580_v41 = vld [vmem:[%s2503_s7 + $0x8] sm:$0xff] }
 0x1ce   : > { %v786_v48 = vmul.f32 2.1237322e-06, %v2135_v36  ;;  %v1588_v42 = vld [vmem:[%s2503_s7 + $0x48] sm:$0xff]  ;;  %1222 = vmatpush.bf16.msra.mxu2 %v1580_v41 }
 0x1cf   : > { %v747_v47 = vadd.f32 0.00028619796, %v746_v43  ;;  %v2153_v49 = vmul.f32 0.70710677, %v2145_v44  ;;  %v2156_v50 = vmul.f32 0.70710677, %v2148_v45  ;;  %1241 = vmatpush.bf16.msra.mxu3 %v1588_v42 }
 0x1d0   : > { %v758_v53 = vadd.f32 0.001143296, %v757_v46  ;;  %v787_v28 = vadd.f32 0.00028619796, %v786_v48 }
 0x1d1   : > { %v824_v54 = vmul.f32 %v2153_v49, %v2153_v49  ;;  %v864_v55 = vmul.f32 %v2156_v50, %v2156_v50  ;;  %v748_v56 = vmul.f32 %v747_v47, %v2133_v35 }
 0x1d2   : > { %v759_v59 = vmul.f32 %v758_v53, %v2133_v35  ;;  %v788_v10 = vmul.f32 %v787_v28, %v2135_v36  ;;  %v1579_v28 = vld [vmem:[%s2503_s7] sm:$0xff] }
 0x1d3   : > { %v2176_v60 = vmin.f32 %v824_v54, 16.0  ;;  %v2178_v61 = vmin.f32 %v864_v55, 16.0  ;;  %v749_v9 = vadd.f32 0.0036580483, %v748_v56  ;;  %v797_v55 = vmul.f32 3.8918573e-05, %v2135_v36  ;;  %1223 = vmatpush.bf16.msra.mxu2 %v1579_v28  ;;  %1242 = vmatpush.bf16.msra.mxu3 %v1587_v57 }
 0x1d4   : > { %v704_v62 = vpop.f32.mrf.mxu0  ;;  %v723_v63 = vpop.f32.mrf.mxu1  ;;  %v760_v3 = vadd.f32 0.014752088, %v759_v59  ;;  %v789_v13 = vadd.f32 0.0036580483, %v788_v10 }
 0x1d5   : > { %v2181_v0 = vadd.f32 %v704_v62, %v2107_v25  ;;  %v2184_v8 = vadd.f32 %v723_v63, %v2109_v6  ;;  %v826_v1 = vmul.f32 2.1237322e-06, %v2176_v60  ;;  %v866_v2 = vmul.f32 2.1237322e-06, %v2178_v61 }
 0x1d6   : > { %v761_v14 = vmul.f32 %v760_v3, %v2133_v35  ;;  %v750_v5 = vmul.f32 %v749_v9, %v2133_v35  ;;  %v790_v47 = vmul.f32 %v789_v13, %v2135_v36  ;;  %v837_v52 = vmul.f32 3.8918573e-05, %v2176_v60 }
 0x1d7   : > { %v827_v11 = vadd.f32 0.00028619796, %v826_v1  ;;  %v867_v33 = vadd.f32 0.00028619796, %v866_v2  ;;  %v2190_v12 = vmul.f32 0.70710677, %v2181_v0 }
 0x1d8   : > { %v2194_v16 = vmul.f32 0.70710677, %v2184_v8  ;;  %v762_v23 = vadd.f32 0.112945676, %v761_v14  ;;  %v751_v46 = vadd.f32 0.05243302, %v750_v5 }
 0x1d9   : > { %v828_v18 = vmul.f32 %v827_v11, %v2176_v60  ;;  %v868_v40 = vmul.f32 %v867_v33, %v2178_v61  ;;  %v904_v19 = vmul.f32 %v2190_v12, %v2190_v12  ;;  %v791_v62 = vadd.f32 0.05243302, %v790_v47 }
 0x1da   : > { %v944_v20 = vmul.f32 %v2194_v16, %v2194_v16  ;;  %v763_v43 = vmul.f32 %v762_v23, %v2133_v35  ;;  %v752_v59 = vmul.f32 %v751_v46, %v2133_v35  ;;  %v838_v10 = vadd.f32 0.001143296, %v837_v52 }
 0x1db   : > { %v829_v24 = vadd.f32 0.0036580483, %v828_v18  ;;  %v2215_v15 = vmin.f32 %v904_v19, 16.0  ;;  %v869_v31 = vadd.f32 0.0036580483, %v868_v40  ;;  %v792_v40 = vmul.f32 %v791_v62, %v2135_v36 }
 0x1dc   : > { %v706_v27 = vpop.f32.mrf.mxu0  ;;  %v725_v29 = vpop.f32.mrf.mxu1  ;;  %v2217_v32 = vmin.f32 %v944_v20, 16.0  ;;  %v764_v58 = vadd.f32 0.4994258, %v763_v43  ;;  %v798_v33 = vadd.f32 0.001143296, %v797_v55  ;;  %v839_v19 = vmul.f32 %v838_v10, %v2176_v60 }
 0x1dd   : > { %v906_v34 = vmul.f32 2.1237322e-06, %v2215_v15  ;;  %v2221_v37 = vadd.f32 %v706_v27, %v2107_v25  ;;  %v2224_v39 = vadd.f32 %v725_v29, %v2109_v6  ;;  %v830_v25 = vmul.f32 %v829_v24, %v2176_v60 }
 0x1de   : > { %v870_v6 = vmul.f32 %v869_v31, %v2178_v61  ;;  %v946_v51 = vmul.f32 2.1237322e-06, %v2217_v32  ;;  %v765_v9 = vmul.f32 %v764_v58, %v2133_v35  ;;  %v753_v18 = vadd.f32 0.18741608, %v752_v59 }
 0x1df   : > { %v907_v48 = vadd.f32 0.00028619796, %v906_v34  ;;  %v2240_v54 = vmul.f32 0.70710677, %v2221_v37  ;;  %v2244_v56 = vmul.f32 0.70710677, %v2224_v39  ;;  %v799_v5 = vmul.f32 %v798_v33, %v2135_v36 }
 0x1e0   : > { %v831_v63 = vadd.f32 0.05243302, %v830_v25  ;;  %v871_v2 = vadd.f32 0.05243302, %v870_v6  ;;  %v947_v3 = vadd.f32 0.00028619796, %v946_v51  ;;  %v754_v29 = vmul.f32 %v753_v18, %v2133_v35 }
 0x1e1   : > { %v908_v53 = vmul.f32 %v907_v48, %v2215_v15  ;;  %v984_v1 = vmul.f32 %v2240_v54, %v2240_v54  ;;  %v1024_v17 = vmul.f32 %v2244_v56, %v2244_v56  ;;  %v2260_v4 = vadd.f32 1.0, %v765_v9 }
 0x1e2   : > { %v832_v20 = vmul.f32 %v831_v63, %v2176_v60  ;;  %v872_v21 = vmul.f32 %v871_v2, %v2178_v61  ;;  %v948_v22 = vmul.f32 %v947_v3, %v2217_v32  ;;  %v2271_v13 = vmul.f32 0.5, %v2112_v38 }
 0x1e3   : > { %v909_v11 = vadd.f32 0.0036580483, %v908_v53  ;;  %v2256_v14 = vmin.f32 %v984_v1, 16.0  ;;  %1686 = vrcp.f32 %v2260_v4  ;;  %v2274_v27 = vmin.f32 %v1024_v17, 16.0 }
 0x1e4   : > { %v2278_v31 = vmul.f32 0.5, %v2115_v30  ;;  %v793_v34 = vadd.f32 0.18741608, %v792_v40  ;;  %v840_v41 = vadd.f32 0.014752088, %v839_v19  ;;  %v2281_v47 = vmul.f32 0.5, %v2145_v44 }
 0x1e5   : > { %v910_v23 = vmul.f32 %v909_v11, %v2215_v15  ;;  %v986_v24 = vmul.f32 2.1237322e-06, %v2256_v14  ;;  %v833_v42 = vadd.f32 0.18741608, %v832_v20  ;;  %v873_v43 = vadd.f32 0.18741608, %v872_v21 }
 0x1e6   : > { %v949_v46 = vadd.f32 0.0036580483, %v948_v22  ;;  %v841_v38 = vmul.f32 %v840_v41, %v2176_v60  ;;  %v800_v48 = vadd.f32 0.014752088, %v799_v5  ;;  %v1026_v52 = vmul.f32 2.1237322e-06, %v2274_v27 }
 0x1e7   : > { %v911_v25 = vadd.f32 0.05243302, %v910_v23  ;;  %v987_v51 = vadd.f32 0.00028619796, %v986_v24  ;;  %v877_v35 = vmul.f32 3.8918573e-05, %v2178_v61  ;;  %v794_v53 = vmul.f32 %v793_v34, %v2135_v36 }
 0x1e8   : > { %v755_v30 = vadd.f32 1.1283791, %v754_v29  ;;  %v842_v28 = vadd.f32 0.112945676, %v841_v38  ;;  %v834_v57 = vmul.f32 %v833_v42, %v2176_v60  ;;  %v874_v44 = vmul.f32 %v873_v43, %v2178_v61 }
 0x1e9   : > { %v1687_v6 = vpop.eup %1686  ;;  %v950_v58 = vmul.f32 %v949_v46, %v2217_v32  ;;  %v801_v59 = vmul.f32 %v800_v48, %v2135_v36  ;;  %v912_v62 = vmul.f32 %v911_v25, %v2215_v15  ;;  %v878_v2 = vadd.f32 0.001143296, %v877_v35 }
 0x1ea   : > { %v768_v55 = vmul.f32 %v1687_v6, %v2260_v4  ;;  %v843_v1 = vmul.f32 %v842_v28, %v2176_v60  ;;  %v988_v3 = vmul.f32 %v987_v51, %v2256_v14  ;;  %v1027_v9 = vadd.f32 0.00028619796, %v1026_v52 }
 0x1eb   : > { %vm773_vm13 = vweird.f32 %v1687_v6  ;;  %v802_v10 = vadd.f32 0.112945676, %v801_v59  ;;  %v879_v17 = vmul.f32 %v878_v2, %v2178_v61  ;;  %v917_v18 = vmul.f32 3.8918573e-05, %v2215_v15 }
 0x1ec   : > { %v769_v63 = vsub.f32 1.0, %v768_v55  ;;  %v844_v33 = vadd.f32 0.4994258, %v843_v1  ;;  %vm772_vm14 = vweird.f32 %v2260_v4  ;;  %v776_v40 = vand.u32 2147483647, %v2260_v4 }
 0x1ed   : > { %v778_v19 = vand.u32 2147483648, %v2260_v4  ;;  %v803_v20 = vmul.f32 %v802_v10, %v2135_v36  ;;  %v880_v23 = vadd.f32 0.014752088, %v879_v17  ;;  %v918_v5 = vadd.f32 0.001143296, %v917_v18  ;;  %vm2304_vm15 = vmor %vm772_vm14, %vm773_vm13 }
 0x1ee   : > { %v770_v11 = vmul.f32 %v1687_v6, %v769_v63  ;;  %v845_v22 = vmul.f32 %v844_v33, %v2176_v60  ;;  %v795_v24 = vadd.f32 1.1283791, %v794_v53  ;;  %v989_v29 = vadd.f32 0.0036580483, %v988_v3 }
 0x1ef   : > { %v1028_v34 = vmul.f32 %v1027_v9, %v2274_v27  ;;  %v804_v42 = vadd.f32 0.4994258, %v803_v20  ;;  %v881_v46 = vmul.f32 %v880_v23, %v2178_v61  ;;  %v919_v60 = vmul.f32 %v918_v5, %v2215_v15 }
 0x1f0   : > { %v771_v21 = vadd.f32 %v1687_v6, %v770_v11  ;;  %v2310_v43 = vadd.f32 1.0, %v845_v22  ;;  %v835_v25 = vadd.f32 1.1283791, %v834_v57  ;;  %v875_v38 = vadd.f32 1.1283791, %v874_v44 }
 0x1f1   : > { %v779_v48 = vor.u32 1.1754944e-38, %v778_v19  ;;  %v805_v51 = vmul.f32 %v804_v42, %v2135_v36  ;;  %v913_v52 = vadd.f32 0.18741608, %v912_v62  ;;  %v951_v35 = vadd.f32 0.05243302, %v950_v58 }
 0x1f2   : > { %v775_v4 = vsel %vm2304_vm15, %v1687_v6, %v771_v21  ;;  %vm777_vm0 = vcmp.eq.f32.partialorder %v776_v40, 8.507059e+37  ;;  %1688 = vrcp.f32 %v2310_v43  ;;  %v756_v53 = vmul.f32 %v755_v30, %v2118_v7 }
 0x1f3   : > { %v780_v55 = vsel %vm777_vm0, %v779_v48, %v775_v4  ;;  %v2317_v6 = vadd.f32 1.0, %v805_v51  ;;  %v997_v28 = vmul.f32 3.8918573e-05, %v2256_v14  ;;  %v990_v59 = vmul.f32 %v989_v29, %v2256_v14 }
 0x1f4   : > { %v1029_v63 = vadd.f32 0.0036580483, %v1028_v34  ;;  %v882_v57 = vadd.f32 0.112945676, %v881_v46  ;;  %v920_v44 = vadd.f32 0.014752088, %v919_v60  ;;  %v2322_v1 = vmul.f32 %v795_v24, %v2121_v26 }
 0x1f5   : > { %v836_v36 = vmul.f32 %v835_v25, %v2153_v49  ;;  %v2326_v58 = vmul.f32 0.5, %v2148_v45  ;;  %1690 = vrcp.f32 %v2317_v6  ;;  %v2330_v7 = vmul.f32 %v875_v38, %v2156_v50 }
 0x1f6   : > { %v2333_v30 = vmul.f32 %v913_v52, %v2215_v15  ;;  %v952_v62 = vmul.f32 %v951_v35, %v2217_v32  ;;  %v781_v2 = vmul.f32 %v780_v55, %v756_v53  ;;  %v883_v3 = vmul.f32 %v882_v57, %v2178_v61 }
 0x1f7   : > { %v921_v26 = vmul.f32 %v920_v44, %v2215_v15  ;;  %v998_v9 = vadd.f32 0.001143296, %v997_v28  ;;  %v957_v49 = vmul.f32 3.8918573e-05, %v2217_v32  ;;  %v2339_v10 = vadd.f32 0.05243302, %v990_v59 }
 0x1f8   : > { %v1689_v45 = vpop.eup %1688  ;;  %v1030_v11 = vmul.f32 %v1029_v63, %v2274_v27  ;;  %vm852_vm1 = vweird.f32 %v2310_v43  ;;  %v1037_v50 = vmul.f32 3.8918573e-05, %v2274_v27  ;;  %v856_v17 = vand.u32 2147483647, %v2310_v43 }
 0x1f9   : > { %v848_v33 = vmul.f32 %v1689_v45, %v2310_v43  ;;  %v884_v18 = vadd.f32 0.4994258, %v883_v3  ;;  %v922_v40 = vadd.f32 0.112945676, %v921_v26  ;;  %v858_v19 = vand.u32 2147483648, %v2310_v43 }
 0x1fa   : > { %v999_v20 = vmul.f32 %v998_v9, %v2256_v14  ;;  %v958_v21 = vadd.f32 0.001143296, %v957_v49  ;;  %v1038_v22 = vadd.f32 0.001143296, %v1037_v50  ;;  %v1486_v5 = vclamps-f32 %v781_v2, 1.0 }
 0x1fb   : > { %v1691_v23 = vpop.eup %1690  ;;  %v849_v24 = vsub.f32 1.0, %v848_v33  ;;  %v885_v29 = vmul.f32 %v884_v18, %v2178_v61  ;;  %v923_v34 = vmul.f32 %v922_v40, %v2215_v15  ;;  %vm853_vm2 = vweird.f32 %v1689_v45 }
 0x1fc   : > { %v808_v41 = vmul.f32 %v1691_v23, %v2317_v6  ;;  %v1000_v42 = vadd.f32 0.014752088, %v999_v20  ;;  %v959_v4 = vmul.f32 %v958_v21, %v2217_v32  ;;  %v1039_v38 = vmul.f32 %v1038_v22, %v2274_v27  ;;  %vm854_vm4 = vmor %vm852_vm1, %vm853_vm2 }
 0x1fd   : > { %v850_v46 = vmul.f32 %v1689_v45, %v849_v24  ;;  %v2352_v60 = vadd.f32 1.0, %v885_v29  ;;  %v924_v25 = vadd.f32 0.4994258, %v923_v34  ;;  %vm2355_vm3 = vcmp.eq.f32.partialorder %v856_v17, 8.507059e+37 }
 0x1fe   : > { %v809_v51 = vsub.f32 1.0, %v808_v41  ;;  %v1001_v61 = vmul.f32 %v1000_v42, %v2256_v14  ;;  %v960_v52 = vadd.f32 0.014752088, %v959_v4  ;;  %v859_v53 = vor.u32 1.1754944e-38, %v858_v19 }
 0x1ff   : > { %v851_v35 = vadd.f32 %v1689_v45, %v850_v46  ;;  %v818_v55 = vand.u32 2147483648, %v2317_v6  ;;  %1692 = vrcp.f32 %v2352_v60  ;;  %vm813_vm5 = vweird.f32 %v1691_v23 }
 0x200   : > { %v810_v28 = vmul.f32 %v1691_v23, %v809_v51  ;;  %v925_v59 = vmul.f32 %v924_v25, %v2215_v15  ;;  %v1002_v63 = vadd.f32 0.112945676, %v1001_v61  ;;  %v816_v44 = vand.u32 2147483647, %v2317_v6 }
 0x201   : > { %v855_v57 = vsel %vm854_vm4, %v1689_v45, %v851_v35  ;;  %v961_v2 = vmul.f32 %v960_v52, %v2217_v32  ;;  %v1040_v3 = vadd.f32 0.014752088, %v1039_v38  ;;  %vm812_vm6 = vweird.f32 %v2317_v6 }
 0x202   : > { %v860_v26 = vsel %vm2355_vm3, %v859_v53, %v855_v57  ;;  %v811_v9 = vadd.f32 %v1691_v23, %v810_v28  ;;  %v2371_v49 = vadd.f32 1.0, %v925_v59  ;;  %v1064_v50 = vadd.f32 1.0, %v1486_v5  ;;  %vm814_vm7 = vmor %vm812_vm6, %vm813_vm5 }
 0x203   : > { %v861_v43 = vmul.f32 %v860_v26, %v836_v36  ;;  %v1003_v15 = vmul.f32 %v1002_v63, %v2256_v14  ;;  %v962_v33 = vadd.f32 0.112945676, %v961_v2  ;;  %v819_v17 = vor.u32 1.1754944e-38, %v818_v55 }
 0x204   : > { %v815_v45 = vsel %vm814_vm7, %v1691_v23, %v811_v9  ;;  %1694 = vrcp.f32 %v2371_v49  ;;  %v1041_v18 = vmul.f32 %v1040_v3, %v2274_v27  ;;  %v953_v19 = vadd.f32 0.18741608, %v952_v62 }
 0x205   : > { %v1693_v40 = vpop.eup %1692  ;;  %v1488_v20 = vclamps-f32 %v861_v43, 1.0  ;;  %vm817_vm8 = vcmp.eq.f32.partialorder %v816_v44, 8.507059e+37  ;;  %v1004_v21 = vadd.f32 0.4994258, %v1003_v15  ;;  %v915_v6 = vadd.f32 1.1283791, %v2333_v30 }
 0x206   : > { %v1031_v22 = vadd.f32 0.05243302, %v1030_v11  ;;  %v820_v36 = vsel %vm817_vm8, %v819_v17, %v815_v45  ;;  %v888_v5 = vmul.f32 %v1693_v40, %v2352_v60  ;;  %v992_v24 = vmul.f32 %v2339_v10, %v2256_v14 }
 0x207   : > { %v1066_v23 = vadd.f32 1.0, %v1488_v20  ;;  %v1005_v29 = vmul.f32 %v1004_v21, %v2256_v14  ;;  %v963_v34 = vmul.f32 %v962_v33, %v2217_v32  ;;  %v1072_v41 = vmul.f32 %v1064_v50, %v2271_v13 }
 0x208   : > { %v889_v62 = vsub.f32 1.0, %v888_v5  ;;  %v898_v42 = vand.u32 2147483648, %v2352_v60  ;;  %v1042_v4 = vadd.f32 0.112945676, %v1041_v18  ;;  %v821_v11 = vmul.f32 %v820_v36, %v2322_v1 }
 0x209   : > { %v1074_v30 = vmul.f32 %v1066_v23, %v2281_v47  ;;  %v2386_v46 = vadd.f32 1.0, %v1005_v29  ;;  %v964_v25 = vadd.f32 0.4994258, %v963_v34  ;;  %vm893_vm9 = vweird.f32 %v1693_v40 }
 0x20a   : > { %v1695_v38 = vpop.eup %1694  ;;  %v890_v10 = vmul.f32 %v1693_v40, %v889_v62  ;;  %v896_v48 = vand.u32 2147483647, %v2352_v60  ;;  %v1043_v51 = vmul.f32 %v1042_v4, %v2274_v27  ;;  %v1032_v13 = vmul.f32 %v1031_v22, %v2274_v27 }
 0x20b   : > { %v1080_v61 = vpack.c.bf16 %v1074_v30, %v1072_v41  ;;  %v928_v52 = vmul.f32 %v1695_v38, %v2371_v49  ;;  %1696 = vrcp.f32 %v2386_v46  ;;  %v993_v47 = vadd.f32 0.18741608, %v992_v24 }
 0x20c   : > { %v891_v35 = vadd.f32 %v1693_v40, %v890_v10  ;;  %vm892_vm10 = vweird.f32 %v2352_v60  ;;  %v899_v1 = vor.u32 1.1754944e-38, %v898_v42  ;;  %v1487_v53 = vclamps-f32 %v821_v11, 1.0 }
 0x20d   : > { %1224 = vmatmul.bf16.vlgmr.msra.gmra.mxu2 %v1080_v61  ;;  %vm894_vm11 = vmor %vm892_vm10, %vm893_vm9  ;;  %v929_v55 = vsub.f32 1.0, %v928_v52  ;;  %v965_v28 = vmul.f32 %v964_v25, %v2217_v32  ;;  %v1044_v59 = vadd.f32 0.4994258, %v1043_v51  ;;  %vm897_vm12 = vcmp.eq.f32.partialorder %v896_v48, 8.507059e+37 }
 0x20e   : > { %v895_v63 = vsel %vm894_vm11, %v1693_v40, %v891_v35  ;;  %v936_v57 = vand.u32 2147483647, %v2371_v49  ;;  %v938_v44 = vand.u32 2147483648, %v2371_v49  ;;  %vm933_vm13 = vweird.f32 %v1695_v38 }
 0x20f   : > { %v900_v2 = vsel %vm897_vm12, %v899_v1, %v895_v63  ;;  %v930_v3 = vmul.f32 %v1695_v38, %v929_v55  ;;  %v2397_v26 = vadd.f32 1.0, %v965_v28  ;;  %v954_v60 = vmul.f32 %v953_v19, %v2217_v32 }
 0x210   : > { %v994_v9 = vmul.f32 %v993_v47, %v2256_v14  ;;  %v901_v43 = vmul.f32 %v900_v2, %v2330_v7  ;;  %v1045_v50 = vmul.f32 %v1044_v59, %v2274_v27  ;;  %v1065_v33 = vadd.f32 1.0, %v1487_v53 }
 0x211   : > { %v1697_v15 = vpop.eup %1696  ;;  %v931_v45 = vadd.f32 %v1695_v38, %v930_v3  ;;  %vm932_vm14 = vweird.f32 %v2371_v49  ;;  %1698 = vrcp.f32 %v2397_v26  ;;  %v916_v17 = vmul.f32 %v915_v6, %v2190_v12 }
 0x212   : > { %v1489_v18 = vclamps-f32 %v901_v43, 1.0  ;;  %vm934_vm15 = vmor %vm932_vm14, %vm933_vm13  ;;  %v939_v40 = vor.u32 1.1754944e-38, %v938_v44  ;;  %v1008_v32 = vmul.f32 %v1697_v15, %v2386_v46  ;;  %v1033_v19 = vadd.f32 0.18741608, %v1032_v13 }
 0x213   : > { %v935_v14 = vsel %vm934_vm15, %v1695_v38, %v931_v45  ;;  %vm937_vm0 = vcmp.eq.f32.partialorder %v936_v57, 8.507059e+37  ;;  %v2407_v7 = vadd.f32 1.0, %v1045_v50  ;;  %v995_v20 = vadd.f32 1.1283791, %v994_v9 }
 0x214   : > { %v1067_v21 = vadd.f32 1.0, %v1489_v18  ;;  %v940_v22 = vsel %vm937_vm0, %v939_v40, %v935_v14  ;;  %v1009_v36 = vsub.f32 1.0, %v1008_v32  ;;  %v1073_v49 = vmul.f32 %v1065_v33, %v2278_v31 }
 0x215   : > { %v1016_v5 = vand.u32 2147483647, %v2386_v46  ;;  %v1018_v12 = vand.u32 2147483648, %v2386_v46  ;;  %1700 = vrcp.f32 %v2407_v7  ;;  %v941_v24 = vmul.f32 %v940_v22, %v916_v17 }
 0x216   : > { %v1075_v6 = vmul.f32 %v1067_v21, %v2326_v58  ;;  %v1010_v23 = vmul.f32 %v1697_v15, %v1009_v36  ;;  %vm1013_vm1 = vweird.f32 %v1697_v15  ;;  %vm1012_vm2 = vweird.f32 %v2386_v46  ;;  %v1674_v21 = vld [vmem:[%s2504_s8] ss:$0 sm:$0xff] }
 0x217   : > { %v1699_v29 = vpop.eup %1698  ;;  %v955_v42 = vadd.f32 1.1283791, %v954_v60  ;;  %v996_v31 = vmul.f32 %v995_v20, %v2240_v54  ;;  %v1034_v4 = vmul.f32 %v1033_v19, %v2274_v27  ;;  %vm1014_vm3 = vmor %vm1012_vm2, %vm1013_vm1  ;;  %v1019_v30 = vor.u32 1.1754944e-38, %v1018_v12  ;;  %v1702_v12 = vld [vmem:[%s1940_s30 + $0x6] sm:$0xff] }
 0x218   : > { %v1081_v34 = vpack.c.bf16 %v1075_v6, %v1073_v49  ;;  %v1011_v41 = vadd.f32 %v1697_v15, %v1010_v23  ;;  %v968_v62 = vmul.f32 %v1699_v29, %v2397_v26  ;;  %v1490_v11 = vclamps-f32 %v941_v24, 1.0 }
 0x219   : > { %vm1017_vm4 = vcmp.eq.f32.partialorder %v1016_v5, 8.507059e+37  ;;  %v732_v10 = vmul.f32 0.5, %v2181_v0  ;;  %v976_v46 = vand.u32 2147483647, %v2397_v26  ;;  %v978_v51 = vand.u32 2147483648, %v2397_v26 }
 0x21a   : > { %1243 = vmatmul.bf16.vlgmr.msra.gmra.mxu3 %v1081_v34  ;;  %v1015_v58 = vsel %vm1014_vm3, %v1697_v15, %v1011_v41  ;;  %v969_v25 = vsub.f32 1.0, %v968_v62  ;;  %vm973_vm5 = vweird.f32 %v1699_v29  ;;  %v956_v27 = vmul.f32 %v955_v42, %v2194_v16  ;;  %v1703_v41 = vld [vmem:[%s1940_s30 + $0xe] sm:$0xff] }
 0x21b   : > { %v1701_v38 = vpop.eup %1700  ;;  %v1020_v48 = vsel %vm1017_vm4, %v1019_v30, %v1015_v58  ;;  %v734_v52 = vmul.f32 0.5, %v2221_v37  ;;  %v1035_v47 = vadd.f32 1.1283791, %v1034_v4  ;;  %vm972_vm6 = vweird.f32 %v2397_v26 }
 0x21c   : > { %v1021_v13 = vmul.f32 %v1020_v48, %v996_v31  ;;  %v970_v61 = vmul.f32 %v1699_v29, %v969_v25  ;;  %v1048_v54 = vmul.f32 %v1701_v38, %v2407_v7  ;;  %v1068_v1 = vadd.f32 1.0, %v1490_v11  ;;  %vm974_vm7 = vmor %vm972_vm6, %vm973_vm5  ;;  %v1704_v25 = vld [vmem:[%s1940_s30 + $0x16] sm:$0xff] }
 0x21d   : > { %vm977_vm8 = vcmp.eq.f32.partialorder %v976_v46, 8.507059e+37  ;;  %v979_v55 = vor.u32 1.1754944e-38, %v978_v51  ;;  %v1056_v28 = vand.u32 2147483647, %v2407_v7  ;;  %v1058_v59 = vand.u32 2147483648, %v2407_v7 }
 0x21e   : > { %v1492_v35 = vclamps-f32 %v1021_v13, 1.0  ;;  %v971_v0 = vadd.f32 %v1699_v29, %v970_v61  ;;  %v1049_v53 = vsub.f32 1.0, %v1048_v54  ;;  %vm1053_vm9 = vweird.f32 %v1701_v38  ;;  %v1705_v13 = vld [vmem:[%s1940_s30 + $0x1e] sm:$0xff] }
 0x21f   : > { %vm1052_vm10 = vweird.f32 %v2407_v7  ;;  %v1076_v37 = vmul.f32 %v1068_v1, %v732_v10  ;;  %v1036_v60 = vmul.f32 %v1035_v47, %v2244_v56  ;;  %v1059_v9 = vor.u32 1.1754944e-38, %v1058_v59 }
 0x220   : > { %v1070_v63 = vadd.f32 1.0, %v1492_v35  ;;  %v975_v57 = vsel %vm974_vm7, %v1699_v29, %v971_v0  ;;  %v1050_v44 = vmul.f32 %v1701_v38, %v1049_v53  ;;  %vm1054_vm11 = vmor %vm1052_vm10, %vm1053_vm9  ;;  %vm1057_vm12 = vcmp.eq.f32.partialorder %v1056_v28, 8.507059e+37 }
 0x221   : > { %v980_v16 = vsel %vm977_vm8, %v979_v55, %v975_v57  ;;  %v733_v40 = vmul.f32 0.5, %v2184_v8  ;;  %v735_v32 = vmul.f32 0.5, %v2224_v39  ;;  %v1675_v8 = vld [vmem:[%s2505_s9] ss:$0 sm:$0xff] }
 0x222   : > { %v1078_v2 = vmul.f32 %v1070_v63, %v734_v52  ;;  %v981_v3 = vmul.f32 %v980_v16, %v956_v27  ;;  %v1051_v26 = vadd.f32 %v1701_v38, %v1050_v44 }
 0x224   : > { %v1082_v43 = vpack.c.bf16 %v1078_v2, %v1076_v37  ;;  %v1491_v50 = vclamps-f32 %v981_v3, 1.0  ;;  %v1055_v15 = vsel %vm1054_vm11, %v1701_v38, %v1051_v26 }
 0x225   : > { %v1060_v33 = vsel %vm1057_vm12, %v1059_v9, %v1055_v15 }
 0x226   : > { %1229 = vmatmul.bf16.gmra.mxu2 %v1082_v43  ;;  %v1061_v45 = vmul.f32 %v1060_v33, %v1036_v60  ;;  %v1069_v18 = vadd.f32 1.0, %v1491_v50 }
 0x228   : > { %v1493_v17 = vclamps-f32 %v1061_v45, 1.0  ;;  %v1077_v56 = vmul.f32 %v1069_v18, %v733_v40 }
 0x22a   : > { %v1071_v19 = vadd.f32 1.0, %v1493_v17 }
 0x22c   : > { %v1079_v14 = vmul.f32 %v1071_v19, %v735_v32 }
 0x22e   : > { %v1083_v7 = vpack.c.bf16 %v1079_v14, %v1077_v56 }
 0x230   : > { %1248 = vmatmul.bf16.gmra.mxu3 %v1083_v7 }
 0x290   : > { %v1225_v20 = vpop.f32.mrf.mxu2 }
 0x291   : > { %v1226_v22 = vadd.f32 %v1674_v21, %v1225_v20 }
 0x298   : > { %v1227_v49 = vpop.f32.mrf.mxu2 }
 0x299   : > { %v1228_v24 = vadd.f32 %v1674_v21, %v1227_v49 }
 0x29d   : > { %v1244_v36 = vpop.f32.mrf.mxu3 }
 0x29e   : > { %v1245_v39 = vadd.f32 %v1244_v36, %v1226_v22 }
 0x2a0   : > { %v1258_v5 = vmul.f32 %v1675_v8, %v1245_v39 }
 0x2a2   : > { %v1262_v6 = vadd.f32 %v1702_v12, %v1258_v5 }
 0x2a4   : > { %1266 = vst [vmem:[%s2441_s0] sm:$0xff] %v1262_v6 }
 0x2a5   : > { %v1246_v23 = vpop.f32.mrf.mxu3 }
 0x2a6   : > { %v1247_v29 = vadd.f32 %v1246_v23, %v1228_v24 }
 0x2a8   : > { %v1259_v34 = vmul.f32 %v1675_v8, %v1247_v29 }
 0x2a9   : > { %v1230_v42 = vpop.f32.mrf.mxu2 }
 0x2aa   : > { %v1263_v62 = vadd.f32 %v1703_v41, %v1259_v34  ;;  %v1231_v31 = vadd.f32 %v1674_v21, %v1230_v42 }
 0x2ac   : > { %1267 = vst [vmem:[%s2441_s0 + $0x8] sm:$0xff] %v1263_v62 }
 0x2b1   : > { %v1232_v11 = vpop.f32.mrf.mxu2 }
 0x2b2   : > { %v1233_v10 = vadd.f32 %v1674_v21, %v1232_v11 }
 0x2b3   : > { %v1249_v4 = vpop.f32.mrf.mxu3 }
 0x2b4   : > { %v1250_v30 = vadd.f32 %v1249_v4, %v1231_v31 }
 0x2b6   : > { %v1260_v58 = vmul.f32 %v1675_v8, %v1250_v30 }
 0x2b8   : > { %v1264_v38 = vadd.f32 %v1704_v25, %v1260_v58 }
 0x2ba   : > { %1268 = vst [vmem:[%s2441_s0 + $0x10] sm:$0xff] %v1264_v38 }
 0x2bb   : > { %v1251_v48 = vpop.f32.mrf.mxu3 }
 0x2bc   : > { %v1252_v46 = vadd.f32 %v1251_v48, %v1233_v10 }
 0x2be   : > { %v1261_v51 = vmul.f32 %v1675_v8, %v1252_v46 }
 0x2c0   : > { %v1265_v61 = vadd.f32 %v1705_v13, %v1261_v51 }
 0x2c2   : > { %1269 = vst [vmem:[%s2441_s0 + $0x18] sm:$0xff] %v1265_v61 }
 0x2c3   : > { %1733 = shalt.err (!%p1730_p6)
}
 0x2c4   : > { %s1803_s30 = smov 128   ;;  %s1804_s28 = smov 8  }
 0x2c5   : > { %1597 = dma.vmem_to_hbm [thread:$0]  (%p1911_p3), %s1286_s16, 512, %s1288_s17, %s1271_s23, %s1803_s30, %s1803_s30, %s1804_s28  }
 0x2c6 PF: > { %p1603_p7 = scmp.ge.s32.totalorder %s1800_s20, 2  ;;  %s1302_s0 = sand.u32 1, %s1772_s13  }
 0x2c7   : > { %s1303_s21 = scalar_lea.sflag [#allocation3], %s1302_s0 }
 0x2c8   : > { %p1600_p9 = pnand %p1603_p7, %p1920_p8 }
 0x2ca   : > { %p1601_p10 = pneg %p1600_p9 }
 0x2cc   : > { %1767 = dma.done.wait (%p1601_p10), %s1303_s21, 512  }
 0x2cd   : > { %1769 = vsyncadd (%p1601_p10), %s1303_s21, 4294966784  ;;  %s23_s20 = sadd.s32 1, %s1800_s20   ;;  %s2521_s16 = sld [smem:[#allocation5_spill]] }
 0x2ce   : > { %p20_p11 = scmp.ge.s32.totalorder %s23_s20, 8   ;;  %s2522_s18 = sld [smem:[#allocation6_spill]] }
 0x2cf   : > { %s2523_s13 = smov %s1776_s14  ;;  %s2524_s14 = smov %s1780_s15 }
 0x2d0   : > { %s2525_s15 = smov %s1929_s11  ;;  %s2526_s17 = smov %s1796_s19 }
 0x2d1   : > { %s2527_s19 = smov %s2533_s24  ;;  %22 = sbr.rel (!%p20_p11) target bundleno = 8 (0x8), region = 102 }
 0x2d6   :  { %1309 = vsyncpa [#allocation3], 1 }
 0x2d7   :  { %1311 = vsyncpa [#allocation3 + $0x1], 1 }

// kernel: tpu_custom_call.1
= control target key start
LH: loop header
LB: loop body
LE: loop exit
PB: predicated region body
PF: predicated region fallthrough
CT: control target
= control target key end

     0   :  { %s2496_s0 = inlined_call_operand.vmem [shape: f32[2,108,128], index: 0, kind: input, shape index: {}]   ;;  %s2497_s1 = inlined_call_operand.vmem [shape: f32[7,128], index: 1, kind: input, shape index: {}]   ;;  %s2498_s2 = inlined_call_operand.vmem [shape: f32[1,128], index: 2, kind: input, shape index: {}]   ;;  %s2499_s3 = inlined_call_operand.vmem [shape: f32[1,128], index: 3, kind: input, shape index: {}]   ;;  %s2500_s4 = inlined_call_operand.vmem [shape: f32[1,128], index: 4, kind: input, shape index: {}]   ;;  %s2501_s5 = inlined_call_operand.vmem [shape: bf16[128,256], index: 5, kind: input, shape index: {}]   ;;  %s2502_s6 = inlined_call_operand.vmem [shape: f32[1,256], index: 6, kind: input, shape index: {}]   ;;  %s2503_s7 = inlined_call_operand.vmem [shape: bf16[256,128], index: 7, kind: input, shape index: {}]   ;;  %s2504_s8 = inlined_call_operand.vmem [shape: f32[1,128], index: 8, kind: input, shape index: {}]   ;;  %s2505_s9 = inlined_call_operand.vmem [shape: f32[1,128], index: 9, kind: input, shape index: {}]   ;;  %s2506_s10 = inlined_call_operand.hbm [shape: f32[2,96,128], index: 10, kind: output, shape index: {}]  }
   0x1   :  { %2509 = sst [smem:[#allocation7_spill]] %s2496_s0 }
   0x2   :  { %2510 = sst [smem:[#allocation8_spill]] %s2497_s1 }
   0x3   :  { %15 = vsyncpa [#allocation3], 0 }
   0x4   :  { %17 = vsyncpa [#allocation3 + $0x1], 0  ;;  %s1860_s13 = smov 0   ;;  %s1862_s14 = smov 0  }
   0x5   :  { %s1864_s15 = smov 0   ;;  %s1866_s16 = smov 0  }
   0x6   :  { %s1868_s17 = smov 0   ;;  %s1870_s18 = smov 0  }
   0x7   :  { %s1872_s19 = smov 0   ;;  %s1874_s20 = smov 0  }
   0x8 LB: > { %2511 = sst [smem:[#allocation5_spill]] %s1792_s18  ;;  %s1384_s21 = sadd.s32 4294967295, %s1800_s20   ;;  %s1800_s20 = sphi %s1874_s20, %s23_s20   ;;  %s1796_s19 = sphi %s1872_s19, %s2527_s19   ;;  %s1792_s18 = sphi %s1870_s18, %s2522_s18   ;;  %s1788_s17 = sphi %s1868_s17, %s2526_s17   ;;  %s1784_s16 = sphi %s1866_s16, %s2521_s16   ;;  %s1780_s15 = sphi %s1864_s15, %s2525_s15   ;;  %s1776_s14 = sphi %s1862_s14, %s2524_s14   ;;  %s1772_s13 = sphi %s1860_s13, %s2523_s13  }
   0x9   : > { %s1385_s22 = sadd.s32 4294967294, %s1800_s20   ;;  %s32_s23 = sadd.s32 1, %s1792_s18 }
   0xa   : > { %p33_p0 = scmp.ge.s32.totalorder %s32_s23, 3  ;;  %s35_s24 = sadd.s32 1, %s1796_s19 }
   0xb   : > { %p269_p1 = scmp.ne.s32.totalorder %s1780_s15, %s1776_s14  ;;  %p270_p2 = scmp.eq.s32.totalorder %s1384_s21, 5 }
   0xc   : > { %s2529_s23 = smov (%p33_p0, %s32_s23), 0  ;;  %s2531_s24 = smov (!%p33_p0, %s35_s24), %s1796_s19 }
   0xd   : > { %2512 = sst [smem:[#allocation6_spill]] %s2529_s23  ;;  %s255_s25 = ssub.s32 %s1792_s18, %s2529_s23 }
   0xe   : > { %p1911_p3 = por %p270_p2, %p269_p1  ;;  %p37_p4 = scmp.ge.s32.totalorder %s2531_s24, 2 }
   0xf   : > { %p275_p5 = scmp.ne.s32.totalorder %s1776_s14, %s1772_s13  ;;  %p276_p6 = scmp.eq.s32.totalorder %s1385_s22, 5 }
  0x10   : > { %p1388_p7 = scmp.ge.s32.totalorder %s1800_s20, 1  ;;  %s2533_s24 = smov (%p37_p4, %s2531_s24), 0 }
  0x11   : > { %p1920_p8 = por %p276_p6, %p275_p5  ;;  %p329_p9 = scmp.lt.s32.totalorder %s1800_s20, 7 }
  0x12   : > { %s254_s28 = ssub.s32 %s1796_s19, %s2533_s24  ;;  %s259_s29 = sadd.s32 1, %s1780_s15 }
  0x13   : > { %s256_s30 = sor.u32 %s255_s25, %s254_s28  ;;  %p330_p10 = pnand %p1388_p7, %p329_p9 }
  0x14   : > { %p257_p11 = scmp.eq.s32.totalorder %s256_s30, 0  ;;  %p367_p12 = scmp.lt.s32.totalorder (!%p330_p10), %s1788_s17, 1 }
  0x15   : > { %333 = sbr.rel (%p330_p10) target bundleno = 710 (0x2c6), region = 60  ;;  %s2515_s1 = sld [smem:[#allocation8_spill]] (!%p330_p10) }
  0x16   : > { %s1929_s11 = scalar_select %p257_p11, %s1780_s15, %s259_s29  }
  0x17   : > { %s1391_s18 = sshll.u32 (!%p330_p10), %s1784_s16, 5  ;;  %s2516_s0 = sld [smem:[#allocation7_spill]] (!%p330_p10) }
  0x18   : > { %s364_s28 = sand.u32 (!%p330_p10), 1, %s1776_s14   ;;  %s1726_s25 = scalar_lea.hbm (!%p330_p10), %s2506_s10, 192 }
  0x1a   : > { %s368_s12 = scalar_select %p367_p12, %s1788_s17, 1  ;;  %v1671_v62 = vld [vmem:[%s2498_s2] ss:$0 sm:$0xff] }
  0x1b   : > { %v374_v0 = vld [vmem:[%s2515_s1] sm:$0x7f]  ;;  %s1596_s1 = smul.u32 12, %s1788_s17 }
  0x1c   : > { %s1595_s23 = smul.u32 112, %s368_s12  ;;  %v380_v1 = vperm.slane %v374_v0, 0  ;;  %v391_v2 = vperm.slane %v374_v0, 1  ;;  %v406_v3 = vperm.slane %v374_v0, 2  ;;  %v421_v4 = vperm.slane %v374_v0, 3  ;;  %s1559_s12 = sshll.u32 %s1784_s16, 2 }
  0x1d   : > { %v436_v13 = vperm.slane %v374_v0, 4  ;;  %v451_v15 = vperm.slane %v374_v0, 5  ;;  %v466_v26 = vperm.slane %v374_v0, 6  ;;  %s1282_s21 = sadd.s32 %s1596_s1, %s1559_s12 }
  0x1e   : > { %s371_s29 = scalar_lea.vmem %s2516_s0, %s1595_s23  ;;  %s1389_s23 = sshll.u32 %s364_s28, 5 }
  0x1f   : > { %s1940_s30 = scalar_lea.vmem %s371_s29, %s1391_s18  ;;  %s2441_s0 = scalar_lea.vmem [#allocation2], %s1389_s23 }
  0x20   : > { %v378_v5 = vld [vmem:[%s1940_s30 + $0x10] sm:$0xff]  ;;  %v1410_v12 = vld [vmem:[%s1940_s30 + $0x18] sm:$0xff]  ;;  %v376_v16 = vld [vmem:[%s1940_s30] sm:$0xff]  ;;  %s1560_s22 = sshll.u32 %s1282_s21, 3  ;;  %s1285_s16 = sshll.u32 %s2441_s0, 4  ;;  %s1286_s16 = int_to_ptr.vmem [resolvable:$true] %s1285_s16 }
  0x21   : > { %v1944_v6 = vld [vmem:[%s1940_s30 + $0x12] sm:$0xff]  ;;  %v383_v8 = vmul.f32 %v380_v1, %v378_v5  ;;  %v1415_v14 = vld [vmem:[%s1940_s30 + $0x1a] sm:$0xff]  ;;  %v1393_v17 = vld [vmem:[%s1940_s30 + $0x2] sm:$0xff]  ;;  %v384_v18 = vmul.f32 %v1410_v12, %v380_v1  ;;  %v381_v22 = vmul.f32 %v380_v1, %v376_v16  ;;  %v439_v32 = vmul.f32 %v1410_v12, %v436_v13  ;;  %s1284_s18 = scalar_lea.hbm %s2506_s10, %s1560_s22  ;;  %s1271_s23 = scalar_lea.sflag [#allocation3], %s364_s28 }
  0x22   : > { %v1947_v7 = vld [vmem:[%s1940_s30 + $0x14] sm:$0xff]  ;;  %v394_v9 = vmul.f32 %v1944_v6, %v391_v2  ;;  %v1420_v21 = vld [vmem:[%s1940_s30 + $0x1c] sm:$0xff]  ;;  %v392_v23 = vmul.f32 %v1393_v17, %v391_v2  ;;  %v1398_v24 = vld [vmem:[%s1940_s30 + $0x4] sm:$0xff]  ;;  %v395_v29 = vmul.f32 %v1415_v14, %v391_v2  ;;  %v454_v38 = vmul.f32 %v1415_v14, %v451_v15  ;;  %s1287_s17 = sshll.u32 %s1284_s18, 4  ;;  %s1288_s17 = int_to_ptr.hbm [resolvable:$true] %s1287_s17 }
  0x23   : > { %v409_v10 = vmul.f32 %v1947_v7, %v406_v3  ;;  %v1405_v11 = vld [vmem:[%s1940_s30 + $0x16] sm:$0xff]  ;;  %v1403_v25 = vld [vmem:[%s1940_s30 + $0x6] sm:$0xff]  ;;  %v407_v27 = vmul.f32 %v1398_v24, %v406_v3  ;;  %v1406_v30 = vld [vmem:[%s1940_s30 + $0x1e] sm:$0xff]  ;;  %v410_v40 = vmul.f32 %v1420_v21, %v406_v3  ;;  %v469_v53 = vmul.f32 %v1420_v21, %v466_v26  ;;  %s1720_s1 = sshra.s32 %s1288_s17, 4  ;;  %s1721_s1 = int_to_ptr.hbm [resolvable:$true] %s1720_s1 }
  0x24   : > { %v398_v19 = vadd.f32 %v394_v9, %v383_v8  ;;  %v424_v20 = vmul.f32 %v1405_v11, %v421_v4  ;;  %v1408_v28 = vld [vmem:[%s1940_s30 + $0x8] sm:$0xff]  ;;  %v396_v33 = vadd.f32 %v392_v23, %v381_v22  ;;  %v422_v34 = vmul.f32 %v1403_v25, %v421_v4  ;;  %v1411_v37 = vld [vmem:[%s1940_s30 + $0x20] sm:$0xff]  ;;  %s1722_s12 = scalar_lea.hbm %s1721_s1, 32  ;;  %p1727_p2 = scmp.lt.s32.totalorder %s1721_s1, %s2506_s10 }
  0x25   : > { %v1413_v35 = vld [vmem:[%s1940_s30 + $0xa] sm:$0xff]  ;;  %v399_v39 = vadd.f32 %v395_v29, %v384_v18  ;;  %v425_v41 = vmul.f32 %v1406_v30, %v421_v4  ;;  %v437_v44 = vmul.f32 %v1408_v28, %v436_v13  ;;  %v440_v45 = vmul.f32 %v1411_v37, %v436_v13  ;;  %v1416_v46 = vld [vmem:[%s1940_s30 + $0x22] sm:$0xff]  ;;  %p1723_p13 = scmp.ne.s32.totalorder %s1721_s1, %s1722_s12  ;;  %p1728_p4 = scmp.lt.s32.totalorder %s1726_s25, %s1722_s12 }
  0x26   : > { %v413_v31 = vadd.f32 %v409_v10, %v398_v19  ;;  %v1418_v36 = vld [vmem:[%s1940_s30 + $0xc] sm:$0xff]  ;;  %v411_v43 = vadd.f32 %v407_v27, %v396_v33  ;;  %v382_v49 = vmul.f32 %v1408_v28, %v380_v1  ;;  %v393_v50 = vmul.f32 %v1413_v35, %v391_v2  ;;  %v1421_v58 = vld [vmem:[%s1940_s30 + $0x24] sm:$0xff] }
  0x27   : > { %v1404_v47 = vld [vmem:[%s1940_s30 + $0xe] sm:$0xff]  ;;  %v414_v48 = vadd.f32 %v410_v40, %v399_v39  ;;  %v408_v51 = vmul.f32 %v1418_v36, %v406_v3  ;;  %v452_v55 = vmul.f32 %v1413_v35, %v451_v15  ;;  %v455_v57 = vmul.f32 %v1416_v46, %v451_v15  ;;  %p1724_p0 = pnand %p1723_p13, %p1911_p3  ;;  %p1729_p5 = por %p1728_p4, %p1727_p2 }
  0x28   : > { %v428_v42 = vadd.f32 %v424_v20, %v413_v31  ;;  %v426_v54 = vadd.f32 %v422_v34, %v411_v43  ;;  %v397_v59 = vadd.f32 %v393_v50, %v382_v49  ;;  %v423_v60 = vmul.f32 %v1404_v47, %v421_v4  ;;  %v1480_v43 = vld [vmem:[%s2501_s5 + $0x70] sm:$0xf]  ;;  %v1482_v47 = vld [vmem:[%s2501_s5 + $0x78] sm:$0xf0]  ;;  %v1472_v49 = vld [vmem:[%s2501_s5 + $0x60] sm:$0xf] }
  0x29   : > { %v429_v56 = vadd.f32 %v425_v41, %v414_v48  ;;  %v467_v0 = vmul.f32 %v1418_v36, %v466_v26  ;;  %v438_v2 = vmul.f32 %v436_v13, %v378_v5  ;;  %v470_v10 = vmul.f32 %v1421_v58, %v466_v26  ;;  %v1576_v50 = vld [vmem:[%s2501_s5 + $0x64] sm:$0xf0]  ;;  %p1725_p1 = pneg %p1724_p0 }
  0x2a   : > { %v443_v52 = vadd.f32 %v439_v32, %v428_v42  ;;  %v441_v63 = vadd.f32 %v437_v44, %v426_v54  ;;  %v412_v1 = vadd.f32 %v408_v51, %v397_v59  ;;  %v453_v14 = vmul.f32 %v1944_v6, %v451_v15  ;;  %v1578_v44 = vld [vmem:[%s2501_s5 + $0x74] sm:$0xf0]  ;;  %v1575_v51 = vld [vmem:[%s2501_s5 + $0x64] sm:$0xf]  ;;  %v1466_v59 = vld [vmem:[%s2501_s5 + $0x58] sm:$0xf0] }
  0x2b   : > { %v444_v8 = vadd.f32 %v440_v45, %v429_v56  ;;  %v468_v18 = vmul.f32 %v1947_v7, %v466_v26  ;;  %v1802_v13 = vmov 128.0   ;;  %v1577_v45 = vld [vmem:[%s2501_s5 + $0x74] sm:$0xf]  ;;  %v1481_v46 = vor.u32 %v1578_v44, %v1480_v43  ;;  %v1574_v56 = vld [vmem:[%s2501_s5 + $0x54] sm:$0xf0]  ;;  %p1730_p6 = pnand %p1729_p5, %p1725_p1 }
  0x2c   : > { %v458_v61 = vadd.f32 %v454_v38, %v443_v52  ;;  %v456_v9 = vadd.f32 %v452_v55, %v441_v63  ;;  %v427_v12 = vadd.f32 %v423_v60, %v412_v1  ;;  %1676 = vrcp.f32 %v1802_v13  ;;  %v1464_v55 = vld [vmem:[%s2501_s5 + $0x50] sm:$0xf]  ;;  %v1571_v63 = vld [vmem:[%s2501_s5 + $0x44] sm:$0xf]  ;;  %v1424_v13 = vld [vmem:[%s2501_s5] sm:$0xf] }
  0x2d   : > { %v459_v11 = vadd.f32 %v455_v57, %v444_v8  ;;  %v1485_v48 = vor.u32 %v1577_v45, %v1482_v47  ;;  %690 = vmatpush.bf16.msra.mxu0 %v1481_v46  ;;  %v1473_v52 = vor.u32 %v1576_v50, %v1472_v49  ;;  %v1573_v57 = vld [vmem:[%s2501_s5 + $0x54] sm:$0xf]  ;;  %v1465_v58 = vor.u32 %v1574_v56, %v1464_v55  ;;  %v1458_v8 = vld [vmem:[%s2501_s5 + $0x48] sm:$0xf0] }
  0x2e   : > { %v473_v3 = vadd.f32 %v469_v53, %v458_v61  ;;  %v471_v17 = vadd.f32 %v467_v0, %v456_v9  ;;  %v442_v4 = vadd.f32 %v438_v2, %v427_v12  ;;  %v1474_v53 = vld [vmem:[%s2501_s5 + $0x68] sm:$0xf0]  ;;  %v1469_v60 = vor.u32 %v1573_v57, %v1466_v59  ;;  %v1456_v61 = vld [vmem:[%s2501_s5 + $0x40] sm:$0xf]  ;;  %v1448_v2 = vld [vmem:[%s2501_s5 + $0x30] sm:$0xf] }
  0x2f   : > { %v474_v20 = vadd.f32 %v470_v10, %v459_v11  ;;  %709 = vmatpush.bf16.msra.mxu1 %v1485_v48  ;;  %v1477_v54 = vor.u32 %v1575_v51, %v1474_v53  ;;  %v1461_v1 = vor.u32 %v1571_v63, %v1458_v8  ;;  %v1569_v9 = vld [vmem:[%s2501_s5 + $0x34] sm:$0xf]  ;;  %v1450_v11 = vld [vmem:[%s2501_s5 + $0x38] sm:$0xf0]  ;;  %v1672_v63 = vld [vmem:[%s2499_s3] ss:$0 sm:$0xff] }
  0x30   : > { %v481_v16 = vadd.f32 %v1671_v62, %v473_v3  ;;  %v479_v19 = vadd.f32 %v1671_v62, %v471_v17  ;;  %v457_v21 = vadd.f32 %v453_v14, %v442_v4  ;;  %v1570_v3 = vld [vmem:[%s2501_s5 + $0x34] sm:$0xf0]  ;;  %v1453_v12 = vor.u32 %v1569_v9, %v1450_v11  ;;  %v1440_v14 = vld [vmem:[%s2501_s5 + $0x20] sm:$0xf]  ;;  %v1567_v17 = vld [vmem:[%s2501_s5 + $0x24] sm:$0xf] }
  0x31   : > { %v482_v23 = vadd.f32 %v1671_v62, %v474_v20  ;;  %691 = vmatpush.bf16.msra.mxu0 %v1473_v52  ;;  %v1449_v10 = vor.u32 %v1570_v3, %v1448_v2  ;;  %v1432_v20 = vld [vmem:[%s2501_s5 + $0x10] sm:$0xf] }
  0x32   : > { %487 = vadd.xlane.f32.xlu1 %v481_v16  ;;  %483 = vadd.xlane.f32.xlu0 %v479_v19  ;;  %v472_v22 = vadd.f32 %v468_v18, %v457_v21  ;;  %v1677_v24 = vpop.eup %1676  ;;  %v1442_v18 = vld [vmem:[%s2501_s5 + $0x28] sm:$0xf0]  ;;  %v1566_v21 = vld [vmem:[%s2501_s5 + $0x14] sm:$0xf0] }
  0x33   : > { %v492_v25 = vmul.f32 128.0, %v1677_v24  ;;  %vm496_vm0 = vweird.f32 %v1677_v24  ;;  %710 = vmatpush.bf16.msra.mxu1 %v1477_v54 }
  0x34   : > { %v480_v5 = vadd.f32 %v1671_v62, %v472_v22  ;;  %v1572_v62 = vld [vmem:[%s2501_s5 + $0x44] sm:$0xf0]  ;;  %v1565_v22 = vld [vmem:[%s2501_s5 + $0x14] sm:$0xf] }
  0x35   : > { %v493_v6 = vsub.f32 1.0, %v492_v25  ;;  %692 = vmatpush.bf16.msra.mxu0 %v1465_v58  ;;  %v1457_v0 = vor.u32 %v1572_v62, %v1456_v61 }
  0x37   : > { %v494_v15 = vmul.f32 %v1677_v24, %v493_v6  ;;  %711 = vmatpush.bf16.msra.mxu1 %v1469_v60  ;;  %v1563_v6 = vld [vmem:[%s2501_s5 + $0x4] sm:$0xf] }
  0x39   : > { %v495_v27 = vadd.f32 %v1677_v24, %v494_v15  ;;  %693 = vmatpush.bf16.msra.mxu0 %v1457_v0  ;;  %v1426_v15 = vld [vmem:[%s2501_s5 + $0x8] sm:$0xf0] }
  0x3a   : > { %489 = vadd.xlane.f32.xlu1 %v482_v23  ;;  %485 = vadd.xlane.f32.xlu0 %v480_v5 }
  0x3b   : > { %v1972_v28 = vsel %vm496_vm0, %v1677_v24, %v495_v27  ;;  %712 = vmatpush.bf16.msra.mxu1 %v1461_v1  ;;  %v1564_v24 = vld [vmem:[%s2501_s5 + $0x4] sm:$0xf0] }
  0x3d   : > { %694 = vmatpush.bf16.msra.mxu0 %v1449_v10  ;;  %v1673_v10 = vld [vmem:[%s2500_s4] ss:$0 sm:$0xff] }
  0x3f   : > { %713 = vmatpush.bf16.msra.mxu1 %v1453_v12 }
  0xa5   : > { %v488_v7 = vpop.xlane.xlu1 %487  ;;  %v484_v29 = vpop.xlane.xlu0 %483 }
  0xa6   : > { %v500_v26 = vmul.f32 %v1972_v28, %v488_v7  ;;  %v498_v31 = vmul.f32 %v1972_v28, %v484_v29 }
  0xa8   : > { %v1975_v30 = vsub.f32 %v481_v16, %v500_v26  ;;  %v1980_v33 = vsub.f32 %v479_v19, %v498_v31  ;;  %v1568_v16 = vld [vmem:[%s2501_s5 + $0x24] sm:$0xf0]  ;;  %v1445_v19 = vor.u32 %v1567_v17, %v1442_v18  ;;  %v1425_v26 = vor.u32 %v1564_v24, %v1424_v13  ;;  %v604_v24 = vld [vmem:[%s2502_s6] sm:$0x3] }
  0xa9   : > { %v1441_v4 = vor.u32 %v1568_v16, %v1440_v14  ;;  %v1429_v31 = vor.u32 %v1563_v6, %v1426_v15  ;;  %v2109_v6 = vperm.slane %v604_v24, 1 }
  0xaa   : > { %v508_v32 = vmul.f32 %v1975_v30, %v1975_v30  ;;  %v506_v34 = vmul.f32 %v1980_v33, %v1980_v33  ;;  %714 = vmatpush.bf16.msra.mxu1 %v1445_v19 }
  0xab   : > { %695 = vmatpush.bf16.msra.mxu0 %v1441_v4 }
  0xac   : > { %514 = vadd.xlane.f32.xlu0 %v508_v32  ;;  %510 = vadd.xlane.f32.xlu2 %v506_v34 }
  0xad   : > { %v490_v35 = vpop.xlane.xlu1 %489  ;;  %v486_v37 = vpop.xlane.xlu0 %485 }
  0xae   : > { %v501_v36 = vmul.f32 %v1972_v28, %v490_v35  ;;  %v499_v39 = vmul.f32 %v1972_v28, %v486_v37 }
  0xb0   : > { %v1985_v38 = vsub.f32 %v482_v23, %v501_v36  ;;  %v1988_v40 = vsub.f32 %v480_v5, %v499_v39  ;;  %v1433_v23 = vor.u32 %v1566_v21, %v1432_v20  ;;  %v1434_v5 = vld [vmem:[%s2501_s5 + $0x18] sm:$0xf0] }
  0xb1   : > { %v1437_v25 = vor.u32 %v1565_v22, %v1434_v5 }
  0xb2   : > { %v509_v41 = vmul.f32 %v1985_v38, %v1985_v38  ;;  %v507_v42 = vmul.f32 %v1988_v40, %v1988_v40  ;;  %696 = vmatpush.bf16.msra.mxu0 %v1433_v23 }
  0xb3   : > { %715 = vmatpush.bf16.msra.mxu1 %v1437_v25  ;;  %v2107_v25 = vperm.slane %v604_v24, 0 }
  0xb4   : > { %516 = vadd.xlane.f32.xlu1 %v509_v41  ;;  %512 = vadd.xlane.f32.xlu2 %v507_v42 }
  0xb6   : > { %697 = vmatpush.bf16.msra.mxu0 %v1425_v26 }
  0xb7   : > { %716 = vmatpush.bf16.msra.mxu1 %v1429_v31  ;;  %v1594_v31 = vld [vmem:[%s2503_s7 + $0x78] sm:$0xff] }
  0xb8   : > { %1235 = vmatpush.bf16.msra.mxu3 %v1594_v31 }
 0x11f   : > { %v515_v27 = vpop.xlane.xlu0 %514  ;;  %v511_v7 = vpop.xlane.xlu2 %510 }
 0x120   : > { %v518_v29 = vmul.f32 %v511_v7, %v1972_v28  ;;  %v520_v32 = vmul.f32 %v515_v27, %v1972_v28 }
 0x122   : > { %v522_v34 = vadd.f32 1e-06, %v518_v29  ;;  %v524_v35 = vadd.f32 1e-06, %v520_v32  ;;  %v1586_v29 = vld [vmem:[%s2503_s7 + $0x38] sm:$0xff] }
 0x123   : > { %1216 = vmatpush.bf16.msra.mxu2 %v1586_v29 }
 0x124   : > { %1678 = vrsqrt.f32 %v522_v34  ;;  %vm532_vm2 = vweird.f32 %v522_v34  ;;  %vm552_vm9 = vweird.f32 %v524_v35 }
 0x125   : > { %1680 = vrsqrt.f32 %v524_v35 }
 0x127   : > { %v517_v36 = vpop.xlane.xlu1 %516  ;;  %v513_v39 = vpop.xlane.xlu2 %512 }
 0x128   : > { %v521_v37 = vmul.f32 %v517_v36, %v1972_v28  ;;  %v519_v42 = vmul.f32 %v513_v39, %v1972_v28  ;;  %v1593_v39 = vld [vmem:[%s2503_s7 + $0x70] sm:$0xff] }
 0x129   : > { %1236 = vmatpush.bf16.msra.mxu3 %v1593_v39 }
 0x12a   : > { %v525_v41 = vadd.f32 1e-06, %v521_v37  ;;  %v1679_v43 = vpop.eup %1678  ;;  %v523_v44 = vadd.f32 1e-06, %v519_v42  ;;  %v1585_v37 = vld [vmem:[%s2503_s7 + $0x30] sm:$0xff] }
 0x12b   : > { %v527_v45 = vmul.f32 %v1679_v43, %v522_v34  ;;  %v1681_v47 = vpop.eup %1680  ;;  %vm533_vm1 = vweird.f32 %v1679_v43  ;;  %1217 = vmatpush.bf16.msra.mxu2 %v1585_v37 }
 0x12c   : > { %1682 = vrsqrt.f32 %v525_v41  ;;  %v547_v54 = vmul.f32 %v1681_v47, %v524_v35  ;;  %vm534_vm3 = vmor %vm532_vm2, %vm533_vm1  ;;  %vm542_vm5 = vweird.f32 %v523_v44  ;;  %vm562_vm7 = vweird.f32 %v525_v41 }
 0x12d   : > { %1684 = vrsqrt.f32 %v523_v44  ;;  %v528_v46 = vmul.f32 %v1679_v43, %v527_v45  ;;  %vm553_vm10 = vweird.f32 %v1681_v47 }
 0x12e   : > { %v548_v57 = vmul.f32 %v1681_v47, %v547_v54  ;;  %vm554_vm12 = vmor %vm552_vm9, %vm553_vm10 }
 0x12f   : > { %v529_v48 = vmul.f32 0.5, %v528_v46 }
 0x130   : > { %v549_v0 = vmul.f32 0.5, %v548_v57  ;;  %v1583_v57 = vld [vmem:[%s2503_s7 + $0x20] sm:$0xff] }
 0x131   : > { %v530_v50 = vsub.f32 1.5, %v529_v48 }
 0x132   : > { %v1683_v49 = vpop.eup %1682  ;;  %v550_v11 = vsub.f32 1.5, %v549_v0 }
 0x133   : > { %v557_v51 = vmul.f32 %v1683_v49, %v525_v41  ;;  %v1685_v52 = vpop.eup %1684  ;;  %v531_v53 = vmul.f32 %v1679_v43, %v530_v50  ;;  %vm563_vm8 = vweird.f32 %v1683_v49 }
 0x134   : > { %v537_v55 = vmul.f32 %v1685_v52, %v523_v44  ;;  %vm543_vm4 = vweird.f32 %v1685_v52  ;;  %vm564_vm11 = vmor %vm562_vm7, %vm563_vm8  ;;  %v551_v17 = vmul.f32 %v1681_v47, %v550_v11 }
 0x135   : > { %v558_v56 = vmul.f32 %v1683_v49, %v557_v51  ;;  %v535_v59 = vsel %vm534_vm3, %v1679_v43, %v531_v53  ;;  %vm544_vm6 = vmor %vm542_vm5, %vm543_vm4  ;;  %v1584_v51 = vld [vmem:[%s2503_s7 + $0x28] sm:$0xff] }
 0x136   : > { %v538_v28 = vmul.f32 %v1685_v52, %v537_v55  ;;  %v566_v62 = vmul.f32 %v535_v59, %v1980_v33  ;;  %1218 = vmatpush.bf16.msra.mxu2 %v1584_v51 }
 0x137   : > { %v559_v60 = vmul.f32 0.5, %v558_v56 }
 0x138   : > { %v539_v58 = vmul.f32 0.5, %v538_v28  ;;  %v574_v9 = vmul.f32 %v1672_v63, %v566_v62 }
 0x139   : > { %v560_v1 = vsub.f32 1.5, %v559_v60 }
 0x13a   : > { %v540_v61 = vsub.f32 1.5, %v539_v58  ;;  %v582_v14 = vadd.f32 %v1673_v10, %v574_v9  ;;  %v1591_v58 = vld [vmem:[%s2503_s7 + $0x60] sm:$0xff]  ;;  %1219 = vmatpush.bf16.msra.mxu2 %v1583_v57 }
 0x13b   : > { %v561_v12 = vmul.f32 %v1683_v49, %v560_v1  ;;  %v1587_v57 = vld [vmem:[%s2503_s7 + $0x40] sm:$0xff] }
 0x13c   : > { %v541_v8 = vmul.f32 %v1685_v52, %v540_v61 }
 0x13d   : > { %v565_v18 = vsel %vm564_vm11, %v1683_v49, %v561_v12 }
 0x13e   : > { %v545_v2 = vsel %vm544_vm6, %v1685_v52, %v541_v8  ;;  %v569_v19 = vmul.f32 %v565_v18, %v1985_v38  ;;  %v1592_v52 = vld [vmem:[%s2503_s7 + $0x68] sm:$0xff] }
 0x13f   : > { %v567_v3 = vmul.f32 %v545_v2, %v1988_v40  ;;  %v555_v40 = vsel %vm554_vm12, %v1681_v47, %v551_v17  ;;  %1237 = vmatpush.bf16.msra.mxu3 %v1592_v52  ;;  %v1582_v17 = vld [vmem:[%s2503_s7 + $0x18] sm:$0xff] }
 0x140   : > { %v568_v20 = vmul.f32 %v555_v40, %v1975_v30  ;;  %v577_v21 = vmul.f32 %v1672_v63, %v569_v19  ;;  %1220 = vmatpush.bf16.msra.mxu2 %v1582_v17 }
 0x141   : > { %v575_v33 = vmul.f32 %v1672_v63, %v567_v3 }
 0x142   : > { %v576_v22 = vmul.f32 %v1672_v63, %v568_v20  ;;  %v585_v23 = vadd.f32 %v1673_v10, %v577_v21  ;;  %v1581_v21 = vld [vmem:[%s2503_s7 + $0x10] sm:$0xff] }
 0x143   : > { %v583_v16 = vadd.f32 %v1673_v10, %v575_v33  ;;  %1238 = vmatpush.bf16.msra.mxu3 %v1591_v58 }
 0x144   : > { %v584_v5 = vadd.f32 %v1673_v10, %v576_v22  ;;  %v1589_v22 = vld [vmem:[%s2503_s7 + $0x50] sm:$0xff]  ;;  %1221 = vmatpush.bf16.msra.mxu2 %v1581_v21 }
 0x145   : > { %v586_v4 = vpack.c.bf16 %v583_v16, %v582_v14 }
 0x146   : > { %v587_v13 = vpack.c.bf16 %v585_v23, %v584_v5 }
 0x147   : > { %698 = vmatmul.bf16.vlgmr.msra.gmra.mxu0 %v586_v4  ;;  %717 = vmatmul.bf16.vlgmr.msra.gmra.mxu1 %v586_v4  ;;  %v1590_v4 = vld [vmem:[%s2503_s7 + $0x58] sm:$0xff] }
 0x148   : > { %1239 = vmatpush.bf16.msra.mxu3 %v1590_v4 }
 0x14c   : > { %1240 = vmatpush.bf16.msra.mxu3 %v1589_v22 }
 0x157   : > { %703 = vmatmul.bf16.gmra.mxu0 %v587_v13  ;;  %722 = vmatmul.bf16.gmra.mxu1 %v587_v13 }
 0x1c4   : > { %v699_v15 = vpop.f32.mrf.mxu0  ;;  %v718_v27 = vpop.f32.mrf.mxu1 }
 0x1c5   : > { %v2112_v38 = vadd.f32 %v699_v15, %v2107_v25  ;;  %v2115_v30 = vadd.f32 %v718_v27, %v2109_v6 }
 0x1c7   : > { %v2118_v7 = vmul.f32 0.70710677, %v2112_v38  ;;  %v2121_v26 = vmul.f32 0.70710677, %v2115_v30 }
 0x1c9   : > { %v744_v32 = vmul.f32 %v2118_v7, %v2118_v7  ;;  %v784_v34 = vmul.f32 %v2121_v26, %v2121_v26 }
 0x1cb   : > { %v2133_v35 = vmin.f32 %v744_v32, 16.0  ;;  %v2135_v36 = vmin.f32 %v784_v34, 16.0 }
 0x1cc   : > { %v701_v41 = vpop.f32.mrf.mxu0  ;;  %v720_v42 = vpop.f32.mrf.mxu1 }
 0x1cd   : > { %v746_v43 = vmul.f32 2.1237322e-06, %v2133_v35  ;;  %v2145_v44 = vadd.f32 %v701_v41, %v2107_v25  ;;  %v2148_v45 = vadd.f32 %v720_v42, %v2109_v6  ;;  %v757_v46 = vmul.f32 3.8918573e-05, %v2133_v35  ;;  %v1580_v41 = vld [vmem:[%s2503_s7 + $0x8] sm:$0xff] }
 0x1ce   : > { %v786_v48 = vmul.f32 2.1237322e-06, %v2135_v36  ;;  %v1588_v42 = vld [vmem:[%s2503_s7 + $0x48] sm:$0xff]  ;;  %1222 = vmatpush.bf16.msra.mxu2 %v1580_v41 }
 0x1cf   : > { %v747_v47 = vadd.f32 0.00028619796, %v746_v43  ;;  %v2153_v49 = vmul.f32 0.70710677, %v2145_v44  ;;  %v2156_v50 = vmul.f32 0.70710677, %v2148_v45  ;;  %1241 = vmatpush.bf16.msra.mxu3 %v1588_v42 }
 0x1d0   : > { %v758_v53 = vadd.f32 0.001143296, %v757_v46  ;;  %v787_v28 = vadd.f32 0.00028619796, %v786_v48 }
 0x1d1   : > { %v824_v54 = vmul.f32 %v2153_v49, %v2153_v49  ;;  %v864_v55 = vmul.f32 %v2156_v50, %v2156_v50  ;;  %v748_v56 = vmul.f32 %v747_v47, %v2133_v35 }
 0x1d2   : > { %v759_v59 = vmul.f32 %v758_v53, %v2133_v35  ;;  %v788_v10 = vmul.f32 %v787_v28, %v2135_v36  ;;  %v1579_v28 = vld [vmem:[%s2503_s7] sm:$0xff] }
 0x1d3   : > { %v2176_v60 = vmin.f32 %v824_v54, 16.0  ;;  %v2178_v61 = vmin.f32 %v864_v55, 16.0  ;;  %v749_v9 = vadd.f32 0.0036580483, %v748_v56  ;;  %v797_v55 = vmul.f32 3.8918573e-05, %v2135_v36  ;;  %1223 = vmatpush.bf16.msra.mxu2 %v1579_v28  ;;  %1242 = vmatpush.bf16.msra.mxu3 %v1587_v57 }
 0x1d4   : > { %v704_v62 = vpop.f32.mrf.mxu0  ;;  %v723_v63 = vpop.f32.mrf.mxu1  ;;  %v760_v3 = vadd.f32 0.014752088, %v759_v59  ;;  %v789_v13 = vadd.f32 0.0036580483, %v788_v10 }
 0x1d5   : > { %v2181_v0 = vadd.f32 %v704_v62, %v2107_v25  ;;  %v2184_v8 = vadd.f32 %v723_v63, %v2109_v6  ;;  %v826_v1 = vmul.f32 2.1237322e-06, %v2176_v60  ;;  %v866_v2 = vmul.f32 2.1237322e-06, %v2178_v61 }
 0x1d6   : > { %v761_v14 = vmul.f32 %v760_v3, %v2133_v35  ;;  %v750_v5 = vmul.f32 %v749_v9, %v2133_v35  ;;  %v790_v47 = vmul.f32 %v789_v13, %v2135_v36  ;;  %v837_v52 = vmul.f32 3.8918573e-05, %v2176_v60 }
 0x1d7   : > { %v827_v11 = vadd.f32 0.00028619796, %v826_v1  ;;  %v867_v33 = vadd.f32 0.00028619796, %v866_v2  ;;  %v2190_v12 = vmul.f32 0.70710677, %v2181_v0 }
 0x1d8   : > { %v2194_v16 = vmul.f32 0.70710677, %v2184_v8  ;;  %v762_v23 = vadd.f32 0.112945676, %v761_v14  ;;  %v751_v46 = vadd.f32 0.05243302, %v750_v5 }
 0x1d9   : > { %v828_v18 = vmul.f32 %v827_v11, %v2176_v60  ;;  %v868_v40 = vmul.f32 %v867_v33, %v2178_v61  ;;  %v904_v19 = vmul.f32 %v2190_v12, %v2190_v12  ;;  %v791_v62 = vadd.f32 0.05243302, %v790_v47 }
 0x1da   : > { %v944_v20 = vmul.f32 %v2194_v16, %v2194_v16  ;;  %v763_v43 = vmul.f32 %v762_v23, %v2133_v35  ;;  %v752_v59 = vmul.f32 %v751_v46, %v2133_v35  ;;  %v838_v10 = vadd.f32 0.001143296, %v837_v52 }
 0x1db   : > { %v829_v24 = vadd.f32 0.0036580483, %v828_v18  ;;  %v2215_v15 = vmin.f32 %v904_v19, 16.0  ;;  %v869_v31 = vadd.f32 0.0036580483, %v868_v40  ;;  %v792_v40 = vmul.f32 %v791_v62, %v2135_v36 }
 0x1dc   : > { %v706_v27 = vpop.f32.mrf.mxu0  ;;  %v725_v29 = vpop.f32.mrf.mxu1  ;;  %v2217_v32 = vmin.f32 %v944_v20, 16.0  ;;  %v764_v58 = vadd.f32 0.4994258, %v763_v43  ;;  %v798_v33 = vadd.f32 0.001143296, %v797_v55  ;;  %v839_v19 = vmul.f32 %v838_v10, %v2176_v60 }
 0x1dd   : > { %v906_v34 = vmul.f32 2.1237322e-06, %v2215_v15  ;;  %v2221_v37 = vadd.f32 %v706_v27, %v2107_v25  ;;  %v2224_v39 = vadd.f32 %v725_v29, %v2109_v6  ;;  %v830_v25 = vmul.f32 %v829_v24, %v2176_v60 }
 0x1de   : > { %v870_v6 = vmul.f32 %v869_v31, %v2178_v61  ;;  %v946_v51 = vmul.f32 2.1237322e-06, %v2217_v32  ;;  %v765_v9 = vmul.f32 %v764_v58, %v2133_v35  ;;  %v753_v18 = vadd.f32 0.18741608, %v752_v59 }
 0x1df   : > { %v907_v48 = vadd.f32 0.00028619796, %v906_v34  ;;  %v2240_v54 = vmul.f32 0.70710677, %v2221_v37  ;;  %v2244_v56 = vmul.f32 0.70710677, %v2224_v39  ;;  %v799_v5 = vmul.f32 %v798_v33, %v2135_v36 }
 0x1e0   : > { %v831_v63 = vadd.f32 0.05243302, %v830_v25  ;;  %v871_v2 = vadd.f32 0.05243302, %v870_v6  ;;  %v947_v3 = vadd.f32 0.00028619796, %v946_v51  ;;  %v754_v29 = vmul.f32 %v753_v18, %v2133_v35 }
 0x1e1   : > { %v908_v53 = vmul.f32 %v907_v48, %v2215_v15  ;;  %v984_v1 = vmul.f32 %v2240_v54, %v2240_v54  ;;  %v1024_v17 = vmul.f32 %v2244_v56, %v2244_v56  ;;  %v2260_v4 = vadd.f32 1.0, %v765_v9 }
 0x1e2   : > { %v832_v20 = vmul.f32 %v831_v63, %v2176_v60  ;;  %v872_v21 = vmul.f32 %v871_v2, %v2178_v61  ;;  %v948_v22 = vmul.f32 %v947_v3, %v2217_v32  ;;  %v2271_v13 = vmul.f32 0.5, %v2112_v38 }
 0x1e3   : > { %v909_v11 = vadd.f32 0.0036580483, %v908_v53  ;;  %v2256_v14 = vmin.f32 %v984_v1, 16.0  ;;  %1686 = vrcp.f32 %v2260_v4  ;;  %v2274_v27 = vmin.f32 %v1024_v17, 16.0 }
 0x1e4   : > { %v2278_v31 = vmul.f32 0.5, %v2115_v30  ;;  %v793_v34 = vadd.f32 0.18741608, %v792_v40  ;;  %v840_v41 = vadd.f32 0.014752088, %v839_v19  ;;  %v2281_v47 = vmul.f32 0.5, %v2145_v44 }
 0x1e5   : > { %v910_v23 = vmul.f32 %v909_v11, %v2215_v15  ;;  %v986_v24 = vmul.f32 2.1237322e-06, %v2256_v14  ;;  %v833_v42 = vadd.f32 0.18741608, %v832_v20  ;;  %v873_v43 = vadd.f32 0.18741608, %v872_v21 }
 0x1e6   : > { %v949_v46 = vadd.f32 0.0036580483, %v948_v22  ;;  %v841_v38 = vmul.f32 %v840_v41, %v2176_v60  ;;  %v800_v48 = vadd.f32 0.014752088, %v799_v5  ;;  %v1026_v52 = vmul.f32 2.1237322e-06, %v2274_v27 }
 0x1e7   : > { %v911_v25 = vadd.f32 0.05243302, %v910_v23  ;;  %v987_v51 = vadd.f32 0.00028619796, %v986_v24  ;;  %v877_v35 = vmul.f32 3.8918573e-05, %v2178_v61  ;;  %v794_v53 = vmul.f32 %v793_v34, %v2135_v36 }
 0x1e8   : > { %v755_v30 = vadd.f32 1.1283791, %v754_v29  ;;  %v842_v28 = vadd.f32 0.112945676, %v841_v38  ;;  %v834_v57 = vmul.f32 %v833_v42, %v2176_v60  ;;  %v874_v44 = vmul.f32 %v873_v43, %v2178_v61 }
 0x1e9   : > { %v1687_v6 = vpop.eup %1686  ;;  %v950_v58 = vmul.f32 %v949_v46, %v2217_v32  ;;  %v801_v59 = vmul.f32 %v800_v48, %v2135_v36  ;;  %v912_v62 = vmul.f32 %v911_v25, %v2215_v15  ;;  %v878_v2 = vadd.f32 0.001143296, %v877_v35 }
 0x1ea   : > { %v768_v55 = vmul.f32 %v1687_v6, %v2260_v4  ;;  %v843_v1 = vmul.f32 %v842_v28, %v2176_v60  ;;  %v988_v3 = vmul.f32 %v987_v51, %v2256_v14  ;;  %v1027_v9 = vadd.f32 0.00028619796, %v1026_v52 }
 0x1eb   : > { %vm773_vm13 = vweird.f32 %v1687_v6  ;;  %v802_v10 = vadd.f32 0.112945676, %v801_v59  ;;  %v879_v17 = vmul.f32 %v878_v2, %v2178_v61  ;;  %v917_v18 = vmul.f32 3.8918573e-05, %v2215_v15 }
 0x1ec   : > { %v769_v63 = vsub.f32 1.0, %v768_v55  ;;  %v844_v33 = vadd.f32 0.4994258, %v843_v1  ;;  %vm772_vm14 = vweird.f32 %v2260_v4  ;;  %v776_v40 = vand.u32 2147483647, %v2260_v4 }
 0x1ed   : > { %v778_v19 = vand.u32 2147483648, %v2260_v4  ;;  %v803_v20 = vmul.f32 %v802_v10, %v2135_v36  ;;  %v880_v23 = vadd.f32 0.014752088, %v879_v17  ;;  %v918_v5 = vadd.f32 0.001143296, %v917_v18  ;;  %vm2304_vm15 = vmor %vm772_vm14, %vm773_vm13 }
 0x1ee   : > { %v770_v11 = vmul.f32 %v1687_v6, %v769_v63  ;;  %v845_v22 = vmul.f32 %v844_v33, %v2176_v60  ;;  %v795_v24 = vadd.f32 1.1283791, %v794_v53  ;;  %v989_v29 = vadd.f32 0.0036580483, %v988_v3 }
 0x1ef   : > { %v1028_v34 = vmul.f32 %v1027_v9, %v2274_v27  ;;  %v804_v42 = vadd.f32 0.4994258, %v803_v20  ;;  %v881_v46 = vmul.f32 %v880_v23, %v2178_v61  ;;  %v919_v60 = vmul.f32 %v918_v5, %v2215_v15 }
 0x1f0   : > { %v771_v21 = vadd.f32 %v1687_v6, %v770_v11  ;;  %v2310_v43 = vadd.f32 1.0, %v845_v22  ;;  %v835_v25 = vadd.f32 1.1283791, %v834_v57  ;;  %v875_v38 = vadd.f32 1.1283791, %v874_v44 }
 0x1f1   : > { %v779_v48 = vor.u32 1.1754944e-38, %v778_v19  ;;  %v805_v51 = vmul.f32 %v804_v42, %v2135_v36  ;;  %v913_v52 = vadd.f32 0.18741608, %v912_v62  ;;  %v951_v35 = vadd.f32 0.05243302, %v950_v58 }
 0x1f2   : > { %v775_v4 = vsel %vm2304_vm15, %v1687_v6, %v771_v21  ;;  %vm777_vm0 = vcmp.eq.f32.partialorder %v776_v40, 8.507059e+37  ;;  %1688 = vrcp.f32 %v2310_v43  ;;  %v756_v53 = vmul.f32 %v755_v30, %v2118_v7 }
 0x1f3   : > { %v780_v55 = vsel %vm777_vm0, %v779_v48, %v775_v4  ;;  %v2317_v6 = vadd.f32 1.0, %v805_v51  ;;  %v997_v28 = vmul.f32 3.8918573e-05, %v2256_v14  ;;  %v990_v59 = vmul.f32 %v989_v29, %v2256_v14 }
 0x1f4   : > { %v1029_v63 = vadd.f32 0.0036580483, %v1028_v34  ;;  %v882_v57 = vadd.f32 0.112945676, %v881_v46  ;;  %v920_v44 = vadd.f32 0.014752088, %v919_v60  ;;  %v2322_v1 = vmul.f32 %v795_v24, %v2121_v26 }
 0x1f5   : > { %v836_v36 = vmul.f32 %v835_v25, %v2153_v49  ;;  %v2326_v58 = vmul.f32 0.5, %v2148_v45  ;;  %1690 = vrcp.f32 %v2317_v6  ;;  %v2330_v7 = vmul.f32 %v875_v38, %v2156_v50 }
 0x1f6   : > { %v2333_v30 = vmul.f32 %v913_v52, %v2215_v15  ;;  %v952_v62 = vmul.f32 %v951_v35, %v2217_v32  ;;  %v781_v2 = vmul.f32 %v780_v55, %v756_v53  ;;  %v883_v3 = vmul.f32 %v882_v57, %v2178_v61 }
 0x1f7   : > { %v921_v26 = vmul.f32 %v920_v44, %v2215_v15  ;;  %v998_v9 = vadd.f32 0.001143296, %v997_v28  ;;  %v957_v49 = vmul.f32 3.8918573e-05, %v2217_v32  ;;  %v2339_v10 = vadd.f32 0.05243302, %v990_v59 }
 0x1f8   : > { %v1689_v45 = vpop.eup %1688  ;;  %v1030_v11 = vmul.f32 %v1029_v63, %v2274_v27  ;;  %vm852_vm1 = vweird.f32 %v2310_v43  ;;  %v1037_v50 = vmul.f32 3.8918573e-05, %v2274_v27  ;;  %v856_v17 = vand.u32 2147483647, %v2310_v43 }
 0x1f9   : > { %v848_v33 = vmul.f32 %v1689_v45, %v2310_v43  ;;  %v884_v18 = vadd.f32 0.4994258, %v883_v3  ;;  %v922_v40 = vadd.f32 0.112945676, %v921_v26  ;;  %v858_v19 = vand.u32 2147483648, %v2310_v43 }
 0x1fa   : > { %v999_v20 = vmul.f32 %v998_v9, %v2256_v14  ;;  %v958_v21 = vadd.f32 0.001143296, %v957_v49  ;;  %v1038_v22 = vadd.f32 0.001143296, %v1037_v50  ;;  %v1486_v5 = vclamps-f32 %v781_v2, 1.0 }
 0x1fb   : > { %v1691_v23 = vpop.eup %1690  ;;  %v849_v24 = vsub.f32 1.0, %v848_v33  ;;  %v885_v29 = vmul.f32 %v884_v18, %v2178_v61  ;;  %v923_v34 = vmul.f32 %v922_v40, %v2215_v15  ;;  %vm853_vm2 = vweird.f32 %v1689_v45 }
 0x1fc   : > { %v808_v41 = vmul.f32 %v1691_v23, %v2317_v6  ;;  %v1000_v42 = vadd.f32 0.014752088, %v999_v20  ;;  %v959_v4 = vmul.f32 %v958_v21, %v2217_v32  ;;  %v1039_v38 = vmul.f32 %v1038_v22, %v2274_v27  ;;  %vm854_vm4 = vmor %vm852_vm1, %vm853_vm2 }
 0x1fd   : > { %v850_v46 = vmul.f32 %v1689_v45, %v849_v24  ;;  %v2352_v60 = vadd.f32 1.0, %v885_v29  ;;  %v924_v25 = vadd.f32 0.4994258, %v923_v34  ;;  %vm2355_vm3 = vcmp.eq.f32.partialorder %v856_v17, 8.507059e+37 }
 0x1fe   : > { %v809_v51 = vsub.f32 1.0, %v808_v41  ;;  %v1001_v61 = vmul.f32 %v1000_v42, %v2256_v14  ;;  %v960_v52 = vadd.f32 0.014752088, %v959_v4  ;;  %v859_v53 = vor.u32 1.1754944e-38, %v858_v19 }
 0x1ff   : > { %v851_v35 = vadd.f32 %v1689_v45, %v850_v46  ;;  %v818_v55 = vand.u32 2147483648, %v2317_v6  ;;  %1692 = vrcp.f32 %v2352_v60  ;;  %vm813_vm5 = vweird.f32 %v1691_v23 }
 0x200   : > { %v810_v28 = vmul.f32 %v1691_v23, %v809_v51  ;;  %v925_v59 = vmul.f32 %v924_v25, %v2215_v15  ;;  %v1002_v63 = vadd.f32 0.112945676, %v1001_v61  ;;  %v816_v44 = vand.u32 2147483647, %v2317_v6 }
 0x201   : > { %v855_v57 = vsel %vm854_vm4, %v1689_v45, %v851_v35  ;;  %v961_v2 = vmul.f32 %v960_v52, %v2217_v32  ;;  %v1040_v3 = vadd.f32 0.014752088, %v1039_v38  ;;  %vm812_vm6 = vweird.f32 %v2317_v6 }
 0x202   : > { %v860_v26 = vsel %vm2355_vm3, %v859_v53, %v855_v57  ;;  %v811_v9 = vadd.f32 %v1691_v23, %v810_v28  ;;  %v2371_v49 = vadd.f32 1.0, %v925_v59  ;;  %v1064_v50 = vadd.f32 1.0, %v1486_v5  ;;  %vm814_vm7 = vmor %vm812_vm6, %vm813_vm5 }
 0x203   : > { %v861_v43 = vmul.f32 %v860_v26, %v836_v36  ;;  %v1003_v15 = vmul.f32 %v1002_v63, %v2256_v14  ;;  %v962_v33 = vadd.f32 0.112945676, %v961_v2  ;;  %v819_v17 = vor.u32 1.1754944e-38, %v818_v55 }
 0x204   : > { %v815_v45 = vsel %vm814_vm7, %v1691_v23, %v811_v9  ;;  %1694 = vrcp.f32 %v2371_v49  ;;  %v1041_v18 = vmul.f32 %v1040_v3, %v2274_v27  ;;  %v953_v19 = vadd.f32 0.18741608, %v952_v62 }
 0x205   : > { %v1693_v40 = vpop.eup %1692  ;;  %v1488_v20 = vclamps-f32 %v861_v43, 1.0  ;;  %vm817_vm8 = vcmp.eq.f32.partialorder %v816_v44, 8.507059e+37  ;;  %v1004_v21 = vadd.f32 0.4994258, %v1003_v15  ;;  %v915_v6 = vadd.f32 1.1283791, %v2333_v30 }
 0x206   : > { %v1031_v22 = vadd.f32 0.05243302, %v1030_v11  ;;  %v820_v36 = vsel %vm817_vm8, %v819_v17, %v815_v45  ;;  %v888_v5 = vmul.f32 %v1693_v40, %v2352_v60  ;;  %v992_v24 = vmul.f32 %v2339_v10, %v2256_v14 }
 0x207   : > { %v1066_v23 = vadd.f32 1.0, %v1488_v20  ;;  %v1005_v29 = vmul.f32 %v1004_v21, %v2256_v14  ;;  %v963_v34 = vmul.f32 %v962_v33, %v2217_v32  ;;  %v1072_v41 = vmul.f32 %v1064_v50, %v2271_v13 }
 0x208   : > { %v889_v62 = vsub.f32 1.0, %v888_v5  ;;  %v898_v42 = vand.u32 2147483648, %v2352_v60  ;;  %v1042_v4 = vadd.f32 0.112945676, %v1041_v18  ;;  %v821_v11 = vmul.f32 %v820_v36, %v2322_v1 }
 0x209   : > { %v1074_v30 = vmul.f32 %v1066_v23, %v2281_v47  ;;  %v2386_v46 = vadd.f32 1.0, %v1005_v29  ;;  %v964_v25 = vadd.f32 0.4994258, %v963_v34  ;;  %vm893_vm9 = vweird.f32 %v1693_v40 }
 0x20a   : > { %v1695_v38 = vpop.eup %1694  ;;  %v890_v10 = vmul.f32 %v1693_v40, %v889_v62  ;;  %v896_v48 = vand.u32 2147483647, %v2352_v60  ;;  %v1043_v51 = vmul.f32 %v1042_v4, %v2274_v27  ;;  %v1032_v13 = vmul.f32 %v1031_v22, %v2274_v27 }
 0x20b   : > { %v1080_v61 = vpack.c.bf16 %v1074_v30, %v1072_v41  ;;  %v928_v52 = vmul.f32 %v1695_v38, %v2371_v49  ;;  %1696 = vrcp.f32 %v2386_v46  ;;  %v993_v47 = vadd.f32 0.18741608, %v992_v24 }
 0x20c   : > { %v891_v35 = vadd.f32 %v1693_v40, %v890_v10  ;;  %vm892_vm10 = vweird.f32 %v2352_v60  ;;  %v899_v1 = vor.u32 1.1754944e-38, %v898_v42  ;;  %v1487_v53 = vclamps-f32 %v821_v11, 1.0 }
 0x20d   : > { %1224 = vmatmul.bf16.vlgmr.msra.gmra.mxu2 %v1080_v61  ;;  %vm894_vm11 = vmor %vm892_vm10, %vm893_vm9  ;;  %v929_v55 = vsub.f32 1.0, %v928_v52  ;;  %v965_v28 = vmul.f32 %v964_v25, %v2217_v32  ;;  %v1044_v59 = vadd.f32 0.4994258, %v1043_v51  ;;  %vm897_vm12 = vcmp.eq.f32.partialorder %v896_v48, 8.507059e+37 }
 0x20e   : > { %v895_v63 = vsel %vm894_vm11, %v1693_v40, %v891_v35  ;;  %v936_v57 = vand.u32 2147483647, %v2371_v49  ;;  %v938_v44 = vand.u32 2147483648, %v2371_v49  ;;  %vm933_vm13 = vweird.f32 %v1695_v38 }
 0x20f   : > { %v900_v2 = vsel %vm897_vm12, %v899_v1, %v895_v63  ;;  %v930_v3 = vmul.f32 %v1695_v38, %v929_v55  ;;  %v2397_v26 = vadd.f32 1.0, %v965_v28  ;;  %v954_v60 = vmul.f32 %v953_v19, %v2217_v32 }
 0x210   : > { %v994_v9 = vmul.f32 %v993_v47, %v2256_v14  ;;  %v901_v43 = vmul.f32 %v900_v2, %v2330_v7  ;;  %v1045_v50 = vmul.f32 %v1044_v59, %v2274_v27  ;;  %v1065_v33 = vadd.f32 1.0, %v1487_v53 }
 0x211   : > { %v1697_v15 = vpop.eup %1696  ;;  %v931_v45 = vadd.f32 %v1695_v38, %v930_v3  ;;  %vm932_vm14 = vweird.f32 %v2371_v49  ;;  %1698 = vrcp.f32 %v2397_v26  ;;  %v916_v17 = vmul.f32 %v915_v6, %v2190_v12 }
 0x212   : > { %v1489_v18 = vclamps-f32 %v901_v43, 1.0  ;;  %vm934_vm15 = vmor %vm932_vm14, %vm933_vm13  ;;  %v939_v40 = vor.u32 1.1754944e-38, %v938_v44  ;;  %v1008_v32 = vmul.f32 %v1697_v15, %v2386_v46  ;;  %v1033_v19 = vadd.f32 0.18741608, %v1032_v13 }
 0x213   : > { %v935_v14 = vsel %vm934_vm15, %v1695_v38, %v931_v45  ;;  %vm937_vm0 = vcmp.eq.f32.partialorder %v936_v57, 8.507059e+37  ;;  %v2407_v7 = vadd.f32 1.0, %v1045_v50  ;;  %v995_v20 = vadd.f32 1.1283791, %v994_v9 }
 0x214   : > { %v1067_v21 = vadd.f32 1.0, %v1489_v18  ;;  %v940_v22 = vsel %vm937_vm0, %v939_v40, %v935_v14  ;;  %v1009_v36 = vsub.f32 1.0, %v1008_v32  ;;  %v1073_v49 = vmul.f32 %v1065_v33, %v2278_v31 }
 0x215   : > { %v1016_v5 = vand.u32 2147483647, %v2386_v46  ;;  %v1018_v12 = vand.u32 2147483648, %v2386_v46  ;;  %1700 = vrcp.f32 %v2407_v7  ;;  %v941_v24 = vmul.f32 %v940_v22, %v916_v17 }
 0x216   : > { %v1075_v6 = vmul.f32 %v1067_v21, %v2326_v58  ;;  %v1010_v23 = vmul.f32 %v1697_v15, %v1009_v36  ;;  %vm1013_vm1 = vweird.f32 %v1697_v15  ;;  %vm1012_vm2 = vweird.f32 %v2386_v46  ;;  %v1674_v21 = vld [vmem:[%s2504_s8] ss:$0 sm:$0xff] }
 0x217   : > { %v1699_v29 = vpop.eup %1698  ;;  %v955_v42 = vadd.f32 1.1283791, %v954_v60  ;;  %v996_v31 = vmul.f32 %v995_v20, %v2240_v54  ;;  %v1034_v4 = vmul.f32 %v1033_v19, %v2274_v27  ;;  %vm1014_vm3 = vmor %vm1012_vm2, %vm1013_vm1  ;;  %v1019_v30 = vor.u32 1.1754944e-38, %v1018_v12  ;;  %v1702_v12 = vld [vmem:[%s1940_s30 + $0x6] sm:$0xff] }
 0x218   : > { %v1081_v34 = vpack.c.bf16 %v1075_v6, %v1073_v49  ;;  %v1011_v41 = vadd.f32 %v1697_v15, %v1010_v23  ;;  %v968_v62 = vmul.f32 %v1699_v29, %v2397_v26  ;;  %v1490_v11 = vclamps-f32 %v941_v24, 1.0 }
 0x219   : > { %vm1017_vm4 = vcmp.eq.f32.partialorder %v1016_v5, 8.507059e+37  ;;  %v732_v10 = vmul.f32 0.5, %v2181_v0  ;;  %v976_v46 = vand.u32 2147483647, %v2397_v26  ;;  %v978_v51 = vand.u32 2147483648, %v2397_v26 }
 0x21a   : > { %1243 = vmatmul.bf16.vlgmr.msra.gmra.mxu3 %v1081_v34  ;;  %v1015_v58 = vsel %vm1014_vm3, %v1697_v15, %v1011_v41  ;;  %v969_v25 = vsub.f32 1.0, %v968_v62  ;;  %vm973_vm5 = vweird.f32 %v1699_v29  ;;  %v956_v27 = vmul.f32 %v955_v42, %v2194_v16  ;;  %v1703_v41 = vld [vmem:[%s1940_s30 + $0xe] sm:$0xff] }
 0x21b   : > { %v1701_v38 = vpop.eup %1700  ;;  %v1020_v48 = vsel %vm1017_vm4, %v1019_v30, %v1015_v58  ;;  %v734_v52 = vmul.f32 0.5, %v2221_v37  ;;  %v1035_v47 = vadd.f32 1.1283791, %v1034_v4  ;;  %vm972_vm6 = vweird.f32 %v2397_v26 }
 0x21c   : > { %v1021_v13 = vmul.f32 %v1020_v48, %v996_v31  ;;  %v970_v61 = vmul.f32 %v1699_v29, %v969_v25  ;;  %v1048_v54 = vmul.f32 %v1701_v38, %v2407_v7  ;;  %v1068_v1 = vadd.f32 1.0, %v1490_v11  ;;  %vm974_vm7 = vmor %vm972_vm6, %vm973_vm5  ;;  %v1704_v25 = vld [vmem:[%s1940_s30 + $0x16] sm:$0xff] }
 0x21d   : > { %vm977_vm8 = vcmp.eq.f32.partialorder %v976_v46, 8.507059e+37  ;;  %v979_v55 = vor.u32 1.1754944e-38, %v978_v51  ;;  %v1056_v28 = vand.u32 2147483647, %v2407_v7  ;;  %v1058_v59 = vand.u32 2147483648, %v2407_v7 }
 0x21e   : > { %v1492_v35 = vclamps-f32 %v1021_v13, 1.0  ;;  %v971_v0 = vadd.f32 %v1699_v29, %v970_v61  ;;  %v1049_v53 = vsub.f32 1.0, %v1048_v54  ;;  %vm1053_vm9 = vweird.f32 %v1701_v38  ;;  %v1705_v13 = vld [vmem:[%s1940_s30 + $0x1e] sm:$0xff] }
 0x21f   : > { %vm1052_vm10 = vweird.f32 %v2407_v7  ;;  %v1076_v37 = vmul.f32 %v1068_v1, %v732_v10  ;;  %v1036_v60 = vmul.f32 %v1035_v47, %v2244_v56  ;;  %v1059_v9 = vor.u32 1.1754944e-38, %v1058_v59 }
 0x220   : > { %v1070_v63 = vadd.f32 1.0, %v1492_v35  ;;  %v975_v57 = vsel %vm974_vm7, %v1699_v29, %v971_v0  ;;  %v1050_v44 = vmul.f32 %v1701_v38, %v1049_v53  ;;  %vm1054_vm11 = vmor %vm1052_vm10, %vm1053_vm9  ;;  %vm1057_vm12 = vcmp.eq.f32.partialorder %v1056_v28, 8.507059e+37 }
 0x221   : > { %v980_v16 = vsel %vm977_vm8, %v979_v55, %v975_v57  ;;  %v733_v40 = vmul.f32 0.5, %v2184_v8  ;;  %v735_v32 = vmul.f32 0.5, %v2224_v39  ;;  %v1675_v8 = vld [vmem:[%s2505_s9] ss:$0 sm:$0xff] }
 0x222   : > { %v1078_v2 = vmul.f32 %v1070_v63, %v734_v52  ;;  %v981_v3 = vmul.f32 %v980_v16, %v956_v27  ;;  %v1051_v26 = vadd.f32 %v1701_v38, %v1050_v44 }
 0x224   : > { %v1082_v43 = vpack.c.bf16 %v1078_v2, %v1076_v37  ;;  %v1491_v50 = vclamps-f32 %v981_v3, 1.0  ;;  %v1055_v15 = vsel %vm1054_vm11, %v1701_v38, %v1051_v26 }
 0x225   : > { %v1060_v33 = vsel %vm1057_vm12, %v1059_v9, %v1055_v15 }
 0x226   : > { %1229 = vmatmul.bf16.gmra.mxu2 %v1082_v43  ;;  %v1061_v45 = vmul.f32 %v1060_v33, %v1036_v60  ;;  %v1069_v18 = vadd.f32 1.0, %v1491_v50 }
 0x228   : > { %v1493_v17 = vclamps-f32 %v1061_v45, 1.0  ;;  %v1077_v56 = vmul.f32 %v1069_v18, %v733_v40 }
 0x22a   : > { %v1071_v19 = vadd.f32 1.0, %v1493_v17 }
 0x22c   : > { %v1079_v14 = vmul.f32 %v1071_v19, %v735_v32 }
 0x22e   : > { %v1083_v7 = vpack.c.bf16 %v1079_v14, %v1077_v56 }
 0x230   : > { %1248 = vmatmul.bf16.gmra.mxu3 %v1083_v7 }
 0x290   : > { %v1225_v20 = vpop.f32.mrf.mxu2 }
 0x291   : > { %v1226_v22 = vadd.f32 %v1674_v21, %v1225_v20 }
 0x298   : > { %v1227_v49 = vpop.f32.mrf.mxu2 }
 0x299   : > { %v1228_v24 = vadd.f32 %v1674_v21, %v1227_v49 }
 0x29d   : > { %v1244_v36 = vpop.f32.mrf.mxu3 }
 0x29e   : > { %v1245_v39 = vadd.f32 %v1244_v36, %v1226_v22 }
 0x2a0   : > { %v1258_v5 = vmul.f32 %v1675_v8, %v1245_v39 }
 0x2a2   : > { %v1262_v6 = vadd.f32 %v1702_v12, %v1258_v5 }
 0x2a4   : > { %1266 = vst [vmem:[%s2441_s0] sm:$0xff] %v1262_v6 }
 0x2a5   : > { %v1246_v23 = vpop.f32.mrf.mxu3 }
 0x2a6   : > { %v1247_v29 = vadd.f32 %v1246_v23, %v1228_v24 }
 0x2a8   : > { %v1259_v34 = vmul.f32 %v1675_v8, %v1247_v29 }
 0x2a9   : > { %v1230_v42 = vpop.f32.mrf.mxu2 }
 0x2aa   : > { %v1263_v62 = vadd.f32 %v1703_v41, %v1259_v34  ;;  %v1231_v31 = vadd.f32 %v1674_v21, %v1230_v42 }
 0x2ac   : > { %1267 = vst [vmem:[%s2441_s0 + $0x8] sm:$0xff] %v1263_v62 }
 0x2b1   : > { %v1232_v11 = vpop.f32.mrf.mxu2 }
 0x2b2   : > { %v1233_v10 = vadd.f32 %v1674_v21, %v1232_v11 }
 0x2b3   : > { %v1249_v4 = vpop.f32.mrf.mxu3 }
 0x2b4   : > { %v1250_v30 = vadd.f32 %v1249_v4, %v1231_v31 }
 0x2b6   : > { %v1260_v58 = vmul.f32 %v1675_v8, %v1250_v30 }
 0x2b8   : > { %v1264_v38 = vadd.f32 %v1704_v25, %v1260_v58 }
 0x2ba   : > { %1268 = vst [vmem:[%s2441_s0 + $0x10] sm:$0xff] %v1264_v38 }
 0x2bb   : > { %v1251_v48 = vpop.f32.mrf.mxu3 }
 0x2bc   : > { %v1252_v46 = vadd.f32 %v1251_v48, %v1233_v10 }
 0x2be   : > { %v1261_v51 = vmul.f32 %v1675_v8, %v1252_v46 }
 0x2c0   : > { %v1265_v61 = vadd.f32 %v1705_v13, %v1261_v51 }
 0x2c2   : > { %1269 = vst [vmem:[%s2441_s0 + $0x18] sm:$0xff] %v1265_v61 }
 0x2c3   : > { %1733 = shalt.err (!%p1730_p6)
}
 0x2c4   : > { %s1803_s30 = smov 128   ;;  %s1804_s28 = smov 8  }
 0x2c5   : > { %1597 = dma.vmem_to_hbm [thread:$0]  (%p1911_p3), %s1286_s16, 512, %s1288_s17, %s1271_s23, %s1803_s30, %s1803_s30, %s1804_s28  }
 0x2c6 PF: > { %p1603_p7 = scmp.ge.s32.totalorder %s1800_s20, 2  ;;  %s1302_s0 = sand.u32 1, %s1772_s13  }
 0x2c7   : > { %s1303_s21 = scalar_lea.sflag [#allocation3], %s1302_s0 }
 0x2c8   : > { %p1600_p9 = pnand %p1603_p7, %p1920_p8 }
 0x2ca   : > { %p1601_p10 = pneg %p1600_p9 }
 0x2cc   : > { %1767 = dma.done.wait (%p1601_p10), %s1303_s21, 512  }
 0x2cd   : > { %1769 = vsyncadd (%p1601_p10), %s1303_s21, 4294966784  ;;  %s23_s20 = sadd.s32 1, %s1800_s20   ;;  %s2521_s16 = sld [smem:[#allocation5_spill]] }
 0x2ce   : > { %p20_p11 = scmp.ge.s32.totalorder %s23_s20, 8   ;;  %s2522_s18 = sld [smem:[#allocation6_spill]] }
 0x2cf   : > { %s2523_s13 = smov %s1776_s14  ;;  %s2524_s14 = smov %s1780_s15 }
 0x2d0   : > { %s2525_s15 = smov %s1929_s11  ;;  %s2526_s17 = smov %s1796_s19 }
 0x2d1   : > { %s2527_s19 = smov %s2533_s24  ;;  %22 = sbr.rel (!%p20_p11) target bundleno = 8 (0x8), region = 102 }
 0x2d6   :  { %1309 = vsyncpa [#allocation3], 1 }
 0x2d7   :  { %1311 = vsyncpa [#allocation3 + $0x1], 1 }

</bundles_post_ra>
